<compile_context>
chip_gen: v7x
topology: tpu7x:2x2x1
jax: 0.10.0
libtpu: 0.0.40
codegen_flags: <defaults>
</compile_context>

<pallas_src>
import functools

import numpy as np

import jax
import jax.numpy as jnp
from jax.experimental import pallas as pl
from jax.experimental.pallas import tpu as pltpu

LN_EPS = 1e-5          # torch.nn.LayerNorm default
BIN_START = 3.25
BIN_END = 20.75
BIN_COUNT = 15
BIN_PAD = 16           # pad bins to 16; the padded bin can never fire


def _layernorm(x, gamma, beta):
    """LayerNorm over the last axis (biased variance, like torch)."""
    mean = jnp.mean(x, axis=-1, keepdims=True)
    xc = x - mean
    var = jnp.mean(xc * xc, axis=-1, keepdims=True)
    return xc * jax.lax.rsqrt(var + LN_EPS) * gamma + beta


# ---------------------------------------------------------------------------
# Fused kernel: grid step (i, j) handles z rows block i / columns block j, and
# the m row block i (written only on the first column step).
# ---------------------------------------------------------------------------
def recycling_kernel(m_ref, xr_ref, xc_ref, z_ref, w_ref,
                     lnm_g_ref, lnm_b_ref, lnz_g_ref, lnz_b_ref,
                     m_out_ref, z_out_ref, *, low2, up_last2):
    br, bc, c_z = z_ref.shape

    # ----- m branch: LayerNorm(m_prev[0]) for this row block, once per row -----
    @pl.when(pl.program_id(1) == 0)
    def _():
        m = m_ref[...].astype(jnp.float32)
        m_out_ref[...] = _layernorm(m, lnm_g_ref[...], lnm_b_ref[...]
                                    ).astype(m_out_ref.dtype)

    # ----- pairwise squared distances via explicit differences (no sqrt / no cancellation) -----
    xr = xr_ref[...]                                     # (br, 8) zero-padded row coords
    xc = xc_ref[...]                                     # (8, bc) transposed column coords
    d2 = None
    for k in range(3):
        diff = xr[:, k:k + 1] - xc[k:k + 1, :]           # (br,1)-(1,bc) -> (br,bc)
        d2 = diff * diff if d2 is None else d2 + diff * diff

    # ----- bin index: 15 full-lane compares on (br, bc) against squared lower edges -----
    # (no lane-padded (br, bc, 16) compare tensor; see perf review)
    cnt = (d2 > low2[0]).astype(jnp.int32)
    for t in low2[1:]:
        cnt = cnt + (d2 > t).astype(jnp.int32)
    cnt = jnp.where(d2 < up_last2, cnt, 0)               # reference's 1e8-Angstrom upper edge
    # NOTE: a point exactly on a bin edge maps to the lower bin here, whereas the
    # reference's strict (>, <) drops it entirely -- measure-zero for real coordinates.

    # ----- one-hot MXU LHS via a single equality-vs-iota compare -----
    iota = jax.lax.broadcasted_iota(jnp.int32, (br, bc, BIN_PAD), 2)
    onehot = ((cnt[:, :, None] - 1) == iota).astype(w_ref.dtype)      # (br, bc, BIN_PAD)
    z_upd = jnp.dot(onehot.reshape(br * bc, BIN_PAD), w_ref[...],
                    preferred_element_type=jnp.float32).reshape(br, bc, c_z)

    # ----- LayerNorm(z_prev) (linear bias folded into beta) + update -----
    # TODO(synk): on v7x, compute the LN row stats with a small ones-matrix matmul on the
    # otherwise-idle MXU instead of cross-lane mean reductions.
    z = z_ref[...].astype(jnp.float32)                   # (br, bc, c_z), upcast in-kernel only
    z_norm = _layernorm(z, lnz_g_ref[...][None], lnz_b_ref[...][None])
    z_out_ref[...] = (z_norm + z_upd).astype(z_out_ref.dtype)


# ---------------------------------------------------------------------------
# VMEM budget / tile sizing
# ---------------------------------------------------------------------------
def _default_vmem_limit():
    cap = None
    try:
        cap = getattr(pltpu.get_tpu_info(), "vmem_capacity_bytes", None)
    except Exception:
        cap = None
    if not cap or cap <= 0:
        cap = 64 * 1024 * 1024                      # conservative (v7x-sized) fallback
    frac = 0.6 if cap <= 64 * 1024 * 1024 else 0.75  # v7x vs v5e/v6e
    return int(cap * frac)


def _pick_tiles(n_res, c_z, z_in_bytes, z_out_bytes, lhs_bytes, vmem_limit_bytes):
    """Pick (block_rows, block_cols): largest tile fitting ~70% of the VMEM limit."""
    czp = 128 * ((c_z + 127) // 128)                # lane-padded channel width
    budget = int(vmem_limit_bytes * 0.70)

    def tile_bytes(br, bc):
        z_in = 2 * br * bc * czp * z_in_bytes       # double-buffered input tiles
        z_out = 2 * br * bc * czp * z_out_bytes     # double-buffered output tiles
        interm = 3 * br * bc * czp * 4              # f32 z / z_norm / z_upd live values
        onehot = br * bc * 128 * max(lhs_bytes, 2)  # BIN_PAD minor dim lane-pads to 128
        small = 2 * 1024 * 1024                     # m blocks, coords, params, headroom
        return z_in + z_out + interm + onehot + small

    cands = [d for d in range(8, n_res + 1, 8) if n_res % d == 0] or [n_res]
    best_key, br, bc = None, cands[0], cands[0]     # smallest legal tile is the floor
    for r in cands:
        for c in cands:
            if tile_bytes(r, c) > budget:
                continue
            key = (r * c, c)                        # biggest tile; then widest columns (big DMAs)
            if best_key is None or key > best_key:
                best_key, br, bc = key, r, c
    if br == n_res and len(cands) > 1:
        br = cands[-2]                              # >= 2 row blocks -> both TCs usable (v7x)
    return br, bc


# ---------------------------------------------------------------------------
# Wrapper
# ---------------------------------------------------------------------------
def recycling_embedder(m_prev, z_prev, x_prev, params, *, block_rows=None, block_cols=None,
                       vmem_limit_bytes=None, mxu_dtype=None, donate_z_prev=False):
    n_res, _, c_z = z_prev.shape
    c_m = m_prev.shape[-1]

    if vmem_limit_bytes is None:
        vmem_limit_bytes = _default_vmem_limit()

    # MXU LHS/weight dtype: bf16 in mixed-precision (bf16) pipelines, f32 otherwise.
    if mxu_dtype is None:
        mxu_dtype = jnp.bfloat16 if z_prev.dtype.itemsize <= 2 else jnp.float32

    if block_rows is None or block_cols is None:
        br_def, bc_def = _pick_tiles(n_res, c_z,
                                     z_prev.dtype.itemsize, z_prev.dtype.itemsize,
                                     np.dtype(mxu_dtype).itemsize, vmem_limit_bytes)
        block_rows = block_rows or br_def
        block_cols = block_cols or bc_def
    assert n_res % block_rows == 0 and n_res % block_cols == 0

    # coords: pad (N,3)->(N,8); column-block-major transposed copy (n_cb, 8, block_cols)
    # so the kernel never transposes or lane-slices dynamically.
    x32 = x_prev.astype(jnp.float32)
    x_pad = jnp.pad(x32, ((0, 0), (0, 8 - x32.shape[-1])))
    n_cb = n_res // block_cols
    x_t3 = x_pad.T.reshape(8, n_cb, block_cols).transpose(1, 0, 2)

    # squared bin edges as compile-time constants (f32-consistent)
    lower = np.linspace(BIN_START, BIN_END, BIN_COUNT, dtype=np.float32)
    low2 = tuple(float(np.float32(v) * np.float32(v)) for v in lower)
    up_last2 = float(np.float32(1e8)) ** 2

    w_pad = jnp.concatenate(
        [params["w"], jnp.zeros((BIN_PAD - BIN_COUNT, c_z), params["w"].dtype)],
        axis=0).astype(mxu_dtype)

    # fold the Linear bias into LayerNorm beta: out = oh@W + norm*gamma + (beta + b)
    lnz_beta_eff = (params["ln_z_beta"] + params["b"]).astype(jnp.float32)[None, :]

    m0 = m_prev[..., 0, :, :]                       # (N_res, c_m), native dtype

    grid = (n_res // block_rows, n_res // block_cols)
    kernel = functools.partial(recycling_kernel, low2=low2, up_last2=up_last2)

    z_spec = pl.BlockSpec((block_rows, block_cols, c_z), lambda i, j: (i, j, 0))

    # Reuse z_prev's HBM buffer for z_out when the caller no longer needs z_prev
    # (true in AlphaFold recycling); z_out now matches z_prev's shape and dtype.
    io_aliases = {3: 1} if donate_z_prev else {}

    m_out, z_out = pl.pallas_call(
        kernel,
        out_shape=(jax.ShapeDtypeStruct((n_res, c_m), m_prev.dtype),
                   jax.ShapeDtypeStruct((n_res, n_res, c_z), z_prev.dtype)),
        grid=grid,
        in_specs=[
            pl.BlockSpec((block_rows, c_m), lambda i, j: (i, 0)),       # m_prev[0] row block
            pl.BlockSpec((block_rows, 8), lambda i, j: (i, 0)),         # coords, row block
            pl.BlockSpec((None, 8, block_cols), lambda i, j: (j, 0, 0)),  # coords^T, col block
            z_spec,                                                     # z_prev (native dtype)
            pl.BlockSpec((BIN_PAD, c_z), lambda i, j: (0, 0)),          # W^T (padded, mxu dtype)
            pl.BlockSpec((1, c_m), lambda i, j: (0, 0)),                # ln_m gamma
            pl.BlockSpec((1, c_m), lambda i, j: (0, 0)),                # ln_m beta
            pl.BlockSpec((1, c_z), lambda i, j: (0, 0)),                # ln_z gamma
            pl.BlockSpec((1, c_z), lambda i, j: (0, 0)),                # ln_z beta + linear bias
        ],
        out_specs=(
            pl.BlockSpec((block_rows, c_m), lambda i, j: (i, 0)),       # m_out row block
            z_spec,                                                     # z_out tile
        ),
        input_output_aliases=io_aliases,
        compiler_params=pltpu.CompilerParams(
            # row blocks are independent (megacore-shardable); the column axis carries
            # the resident m_out block, so it must be "arbitrary" and last.
            dimension_semantics=("parallel", "arbitrary"),
            vmem_limit_bytes=int(vmem_limit_bytes),
        ),
    )(m0, x_pad, x_t3, z_prev, w_pad,
      params["ln_m_gamma"].astype(jnp.float32)[None, :],
      params["ln_m_beta"].astype(jnp.float32)[None, :],
      params["ln_z_gamma"].astype(jnp.float32)[None, :],
      lnz_beta_eff)

    return m_out, z_out


# ---------------------------------------------------------------------------
# Pure-JAX reference (mirrors the PyTorch forward exactly)
# ---------------------------------------------------------------------------
def reference(m_prev, z_prev, x_prev, params):
    diff = x_prev[:, None, :] - x_prev[None, :, :]
    d = jnp.sqrt(jnp.sum(diff * diff, axis=-1))
    lower = jnp.linspace(BIN_START, BIN_END, BIN_COUNT, dtype=jnp.float32)
    upper = jnp.concatenate([lower[1:], jnp.array([1e8], dtype=jnp.float32)])
    oh = jnp.logical_and(d[..., None] > lower, d[..., None] < upper).astype(jnp.float32)
    z_upd = oh @ params["w"] + params["b"]

    def ln(x, g, b):
        mu = jnp.mean(x, -1, keepdims=True)
        v = jnp.mean((x - mu) ** 2, -1, keepdims=True)
        return (x - mu) / jnp.sqrt(v + LN_EPS) * g + b

    z_out = z_upd + ln(z_prev, params["ln_z_gamma"], params["ln_z_beta"])
    m_out = ln(m_prev[..., 0, :, :], params["ln_m_gamma"], params["ln_m_beta"])
    return m_out, z_out


if __name__ == "__main__":
    N_seq, N_res, c_m, c_z = 4, 16, 32, 32

    key = jax.random.PRNGKey(0)
    k = jax.random.split(key, 8)

    m_prev = jax.random.normal(k[0], (N_seq, N_res, c_m), jnp.float32)
    z_prev = jax.random.normal(k[1], (N_res, N_res, c_z), jnp.float32)
    # Coordinates spread over ~[0, 15] Angstrom so several distance bins activate.
    x_prev = jax.random.uniform(k[2], (N_res, 3), jnp.float32, 0.0, 15.0)

    # Linear(bin_count -> c_z): stored transposed (bin_count, c_z) = W^T.
    # W is made exactly bf16-representable so the f32 reference comparison is exact
    # regardless of the MXU's f32 pass precision (the kernel itself is general).
    w = 0.1 * jax.random.normal(k[3], (BIN_COUNT, c_z), jnp.float32)
    w = w.astype(jnp.bfloat16).astype(jnp.float32)

    params = {
        "w": w,
        "b": 0.1 * jax.random.normal(k[4], (c_z,), jnp.float32),
        "ln_m_gamma": 1.0 + 0.1 * jax.random.normal(k[5], (c_m,), jnp.float32),
        "ln_m_beta": 0.1 * jax.random.normal(k[6], (c_m,), jnp.float32),
        "ln_z_gamma": 1.0 + 0.1 * jax.random.normal(k[7], (c_z,), jnp.float32),
        "ln_z_beta": jnp.zeros((c_z,), jnp.float32),
    }

    m_out, z_out = recycling_embedder(m_prev, z_prev, x_prev, params)
    jax.block_until_ready((m_out, z_out))

    m_ref, z_ref = reference(m_prev, z_prev, x_prev, params)
    assert m_out.shape == (N_res, c_m) and z_out.shape == (N_res, N_res, c_z)
    assert m_out.dtype == m_prev.dtype and z_out.dtype == z_prev.dtype
    assert jnp.allclose(m_out, m_ref, atol=1e-3, rtol=1e-3)
    assert jnp.allclose(z_out, z_ref, atol=1e-3, rtol=1e-3)

    print("KERNEL_OK")
</pallas_src>

<mosaic_0001>
module attributes {stable_mosaic.version = 11 : i64} {
  func.func @recycling_kernel(%arg0: i32, %arg1: i32, %arg2: memref<8x32xf32, #tpu.memory_space<vmem>>, %arg3: memref<8x8xf32, #tpu.memory_space<vmem>>, %arg4: memref<1x8x16xf32, #tpu.memory_space<vmem>>, %arg5: memref<8x16x32xf32, #tpu.memory_space<vmem>>, %arg6: memref<16x32xf32, #tpu.memory_space<vmem>>, %arg7: memref<1x32xf32, #tpu.memory_space<vmem>>, %arg8: memref<1x32xf32, #tpu.memory_space<vmem>>, %arg9: memref<1x32xf32, #tpu.memory_space<vmem>>, %arg10: memref<1x32xf32, #tpu.memory_space<vmem>>, %arg11: memref<8x32xf32, #tpu.memory_space<vmem>>, %arg12: memref<8x16x32xf32, #tpu.memory_space<vmem>>) attributes {dimension_semantics = [#tpu.dimension_semantics<parallel>, #tpu.dimension_semantics<arbitrary>], iteration_bounds = array<i64: 2, 1>, scalar_prefetch = 0 : i64, scratch_operands = 0 : i64, tpu.core_type = #tpu.core_type<tc>, window_params = [{transform_indices = @transform_0, window_bounds = array<i64: 8, 32>}, {transform_indices = @transform_1, window_bounds = array<i64: 8, 8>}, {transform_indices = @transform_2, window_bounds = array<i64: 1, 8, 16>}, {transform_indices = @transform_3, window_bounds = array<i64: 8, 16, 32>}, {pipeline_mode = #tpu.pipeline_mode<synchronous>, transform_indices = @transform_4, window_bounds = array<i64: 16, 32>}, {pipeline_mode = #tpu.pipeline_mode<synchronous>, transform_indices = @transform_5, window_bounds = array<i64: 1, 32>}, {pipeline_mode = #tpu.pipeline_mode<synchronous>, transform_indices = @transform_6, window_bounds = array<i64: 1, 32>}, {pipeline_mode = #tpu.pipeline_mode<synchronous>, transform_indices = @transform_7, window_bounds = array<i64: 1, 32>}, {pipeline_mode = #tpu.pipeline_mode<synchronous>, transform_indices = @transform_8, window_bounds = array<i64: 1, 32>}, {transform_indices = @transform_9, window_bounds = array<i64: 8, 32>}, {transform_indices = @transform_10, window_bounds = array<i64: 8, 16, 32>}]} {
    %c0_i32 = arith.constant 0 : i32
    %0 = arith.cmpi eq, %arg1, %c0_i32 : i32
    %1 = arith.extui %0 : i1 to i32
    %c0_i32_0 = arith.constant 0 : i32
    %2 = arith.cmpi ne, %1, %c0_i32_0 : i32
    scf.if %2 {
      %c0_39 = arith.constant 0 : index
      %c0_40 = arith.constant 0 : index
      %128 = vector.load %arg2[%c0_39, %c0_40] : memref<8x32xf32, #tpu.memory_space<vmem>>, vector<8x32xf32>
      %c0_41 = arith.constant 0 : index
      %c0_42 = arith.constant 0 : index
      %129 = vector.load %arg7[%c0_41, %c0_42] : memref<1x32xf32, #tpu.memory_space<vmem>>, vector<1x32xf32>
      %c0_43 = arith.constant 0 : index
      %c0_44 = arith.constant 0 : index
      %130 = vector.load %arg8[%c0_43, %c0_44] : memref<1x32xf32, #tpu.memory_space<vmem>>, vector<1x32xf32>
      %cst_45 = arith.constant dense<0.000000e+00> : vector<8xf32>
      %131 = vector.multi_reduction <add>, %128, %cst_45 [1] : vector<8x32xf32> to vector<8xf32>
      %132 = vector.shape_cast %131 : vector<8xf32> to vector<8x1xf32>
      %cst_46 = arith.constant 3.200000e+01 : f32
      %133 = vector.broadcast %cst_46 : f32 to vector<8x1xf32>
      %134 = arith.divf %132, %133 : vector<8x1xf32>
      %135 = vector.broadcast %134 : vector<8x1xf32> to vector<8x32xf32>
      %136 = arith.subf %128, %135 : vector<8x32xf32>
      %137 = arith.mulf %136, %136 : vector<8x32xf32>
      %cst_47 = arith.constant dense<0.000000e+00> : vector<8xf32>
      %138 = vector.multi_reduction <add>, %137, %cst_47 [1] : vector<8x32xf32> to vector<8xf32>
      %139 = vector.shape_cast %138 : vector<8xf32> to vector<8x1xf32>
      %cst_48 = arith.constant 3.200000e+01 : f32
      %140 = vector.broadcast %cst_48 : f32 to vector<8x1xf32>
      %141 = arith.divf %139, %140 : vector<8x1xf32>
      %cst_49 = arith.constant 9.99999974E-6 : f32
      %142 = vector.broadcast %cst_49 : f32 to vector<8x1xf32>
      %143 = arith.addf %141, %142 : vector<8x1xf32>
      %144 = math.rsqrt %143 : vector<8x1xf32>
      %145 = vector.broadcast %144 : vector<8x1xf32> to vector<8x32xf32>
      %146 = arith.mulf %136, %145 : vector<8x32xf32>
      %147 = vector.broadcast %129 : vector<1x32xf32> to vector<8x32xf32>
      %148 = arith.mulf %146, %147 : vector<8x32xf32>
      %149 = vector.broadcast %130 : vector<1x32xf32> to vector<8x32xf32>
      %150 = arith.addf %148, %149 : vector<8x32xf32>
      %c0_50 = arith.constant 0 : index
      %c0_51 = arith.constant 0 : index
      %151 = vector.load %arg11[%c0_50, %c0_51] : memref<8x32xf32, #tpu.memory_space<vmem>>, vector<8x32xf32>
      tpu.vector_store %arg11[%c0_50, %c0_51], %150 {strides = array<i32>} : memref<8x32xf32, #tpu.memory_space<vmem>>, vector<8x32xf32>,
    } else {
    }
    %c0 = arith.constant 0 : index
    %c0_1 = arith.constant 0 : index
    %3 = vector.load %arg3[%c0, %c0_1] : memref<8x8xf32, #tpu.memory_space<vmem>>, vector<8x8xf32>
    %c0_2 = arith.constant 0 : index
    %c0_3 = arith.constant 0 : index
    %c0_4 = arith.constant 0 : index
    %4 = vector.load %arg4[%c0_2, %c0_3, %c0_4] : memref<1x8x16xf32, #tpu.memory_space<vmem>>, vector<1x8x16xf32>
    %5 = vector.shape_cast %4 : vector<1x8x16xf32> to vector<8x16xf32>
    %6 = vector.extract_strided_slice %3 {offsets = [0, 0], sizes = [8, 1], strides = [1, 1]} : vector<8x8xf32> to vector<8x1xf32>
    %7 = vector.extract_strided_slice %5 {offsets = [0, 0], sizes = [1, 16], strides = [1, 1]} : vector<8x16xf32> to vector<1x16xf32>
    %8 = vector.broadcast %6 : vector<8x1xf32> to vector<8x16xf32>
    %9 = vector.broadcast %7 : vector<1x16xf32> to vector<8x16xf32>
    %10 = arith.subf %8, %9 : vector<8x16xf32>
    %11 = arith.mulf %10, %10 : vector<8x16xf32>
    %12 = vector.extract_strided_slice %3 {offsets = [0, 1], sizes = [8, 1], strides = [1, 1]} : vector<8x8xf32> to vector<8x1xf32>
    %13 = vector.extract_strided_slice %5 {offsets = [1, 0], sizes = [1, 16], strides = [1, 1]} : vector<8x16xf32> to vector<1x16xf32>
    %14 = vector.broadcast %12 : vector<8x1xf32> to vector<8x16xf32>
    %15 = vector.broadcast %13 : vector<1x16xf32> to vector<8x16xf32>
    %16 = arith.subf %14, %15 : vector<8x16xf32>
    %17 = arith.mulf %16, %16 : vector<8x16xf32>
    %18 = arith.addf %11, %17 : vector<8x16xf32>
    %19 = vector.extract_strided_slice %3 {offsets = [0, 2], sizes = [8, 1], strides = [1, 1]} : vector<8x8xf32> to vector<8x1xf32>
    %20 = vector.extract_strided_slice %5 {offsets = [2, 0], sizes = [1, 16], strides = [1, 1]} : vector<8x16xf32> to vector<1x16xf32>
    %21 = vector.broadcast %19 : vector<8x1xf32> to vector<8x16xf32>
    %22 = vector.broadcast %20 : vector<1x16xf32> to vector<8x16xf32>
    %23 = arith.subf %21, %22 : vector<8x16xf32>
    %24 = arith.mulf %23, %23 : vector<8x16xf32>
    %25 = arith.addf %18, %24 : vector<8x16xf32>
    %cst = arith.constant 1.056250e+01 : f32
    %26 = vector.broadcast %cst : f32 to vector<8x16xf32>
    %27 = arith.cmpf ogt, %25, %26 : vector<8x16xf32>
    %28 = arith.extui %27 : vector<8x16xi1> to vector<8x16xi32>
    %cst_5 = arith.constant 2.025000e+01 : f32
    %29 = vector.broadcast %cst_5 : f32 to vector<8x16xf32>
    %30 = arith.cmpf ogt, %25, %29 : vector<8x16xf32>
    %31 = arith.extui %30 : vector<8x16xi1> to vector<8x16xi32>
    %32 = arith.addi %28, %31 : vector<8x16xi32>
    %cst_6 = arith.constant 3.306250e+01 : f32
    %33 = vector.broadcast %cst_6 : f32 to vector<8x16xf32>
    %34 = arith.cmpf ogt, %25, %33 : vector<8x16xf32>
    %35 = arith.extui %34 : vector<8x16xi1> to vector<8x16xi32>
    %36 = arith.addi %32, %35 : vector<8x16xi32>
    %cst_7 = arith.constant 4.900000e+01 : f32
    %37 = vector.broadcast %cst_7 : f32 to vector<8x16xf32>
    %38 = arith.cmpf ogt, %25, %37 : vector<8x16xf32>
    %39 = arith.extui %38 : vector<8x16xi1> to vector<8x16xi32>
    %40 = arith.addi %36, %39 : vector<8x16xi32>
    %cst_8 = arith.constant 6.806250e+01 : f32
    %41 = vector.broadcast %cst_8 : f32 to vector<8x16xf32>
    %42 = arith.cmpf ogt, %25, %41 : vector<8x16xf32>
    %43 = arith.extui %42 : vector<8x16xi1> to vector<8x16xi32>
    %44 = arith.addi %40, %43 : vector<8x16xi32>
    %cst_9 = arith.constant 9.025000e+01 : f32
    %45 = vector.broadcast %cst_9 : f32 to vector<8x16xf32>
    %46 = arith.cmpf ogt, %25, %45 : vector<8x16xf32>
    %47 = arith.extui %46 : vector<8x16xi1> to vector<8x16xi32>
    %48 = arith.addi %44, %47 : vector<8x16xi32>
    %cst_10 = arith.constant 115.5625 : f32
    %49 = vector.broadcast %cst_10 : f32 to vector<8x16xf32>
    %50 = arith.cmpf ogt, %25, %49 : vector<8x16xf32>
    %51 = arith.extui %50 : vector<8x16xi1> to vector<8x16xi32>
    %52 = arith.addi %48, %51 : vector<8x16xi32>
    %cst_11 = arith.constant 1.440000e+02 : f32
    %53 = vector.broadcast %cst_11 : f32 to vector<8x16xf32>
    %54 = arith.cmpf ogt, %25, %53 : vector<8x16xf32>
    %55 = arith.extui %54 : vector<8x16xi1> to vector<8x16xi32>
    %56 = arith.addi %52, %55 : vector<8x16xi32>
    %cst_12 = arith.constant 175.5625 : f32
    %57 = vector.broadcast %cst_12 : f32 to vector<8x16xf32>
    %58 = arith.cmpf ogt, %25, %57 : vector<8x16xf32>
    %59 = arith.extui %58 : vector<8x16xi1> to vector<8x16xi32>
    %60 = arith.addi %56, %59 : vector<8x16xi32>
    %cst_13 = arith.constant 2.102500e+02 : f32
    %61 = vector.broadcast %cst_13 : f32 to vector<8x16xf32>
    %62 = arith.cmpf ogt, %25, %61 : vector<8x16xf32>
    %63 = arith.extui %62 : vector<8x16xi1> to vector<8x16xi32>
    %64 = arith.addi %60, %63 : vector<8x16xi32>
    %cst_14 = arith.constant 248.0625 : f32
    %65 = vector.broadcast %cst_14 : f32 to vector<8x16xf32>
    %66 = arith.cmpf ogt, %25, %65 : vector<8x16xf32>
    %67 = arith.extui %66 : vector<8x16xi1> to vector<8x16xi32>
    %68 = arith.addi %64, %67 : vector<8x16xi32>
    %cst_15 = arith.constant 2.890000e+02 : f32
    %69 = vector.broadcast %cst_15 : f32 to vector<8x16xf32>
    %70 = arith.cmpf ogt, %25, %69 : vector<8x16xf32>
    %71 = arith.extui %70 : vector<8x16xi1> to vector<8x16xi32>
    %72 = arith.addi %68, %71 : vector<8x16xi32>
    %cst_16 = arith.constant 333.0625 : f32
    %73 = vector.broadcast %cst_16 : f32 to vector<8x16xf32>
    %74 = arith.cmpf ogt, %25, %73 : vector<8x16xf32>
    %75 = arith.extui %74 : vector<8x16xi1> to vector<8x16xi32>
    %76 = arith.addi %72, %75 : vector<8x16xi32>
    %cst_17 = arith.constant 3.802500e+02 : f32
    %77 = vector.broadcast %cst_17 : f32 to vector<8x16xf32>
    %78 = arith.cmpf ogt, %25, %77 : vector<8x16xf32>
    %79 = arith.extui %78 : vector<8x16xi1> to vector<8x16xi32>
    %80 = arith.addi %76, %79 : vector<8x16xi32>
    %cst_18 = arith.constant 430.5625 : f32
    %81 = vector.broadcast %cst_18 : f32 to vector<8x16xf32>
    %82 = arith.cmpf ogt, %25, %81 : vector<8x16xf32>
    %83 = arith.extui %82 : vector<8x16xi1> to vector<8x16xi32>
    %84 = arith.addi %80, %83 : vector<8x16xi32>
    %cst_19 = arith.constant 1.000000e+16 : f32
    %85 = vector.broadcast %cst_19 : f32 to vector<8x16xf32>
    %86 = arith.cmpf olt, %25, %85 : vector<8x16xf32>
    %c0_i32_20 = arith.constant 0 : i32
    %87 = vector.broadcast %c0_i32_20 : i32 to vector<8x16xi32>
    %88 = arith.select %86, %84, %87 : vector<8x16xi1>, vector<8x16xi32>
    %89 = tpu.iota {dimensions = array<i32: 2>} : vector<8x16x16xi32>
    %90 = vector.shape_cast %88 : vector<8x16xi32> to vector<8x16x1xi32>
    %c1_i32 = arith.constant 1 : i32
    %91 = vector.broadcast %c1_i32 : i32 to vector<8x16x1xi32>
    %92 = arith.subi %90, %91 : vector<8x16x1xi32>
    %93 = vector.broadcast %92 : vector<8x16x1xi32> to vector<8x16x16xi32>
    %94 = arith.cmpi eq, %93, %89 : vector<8x16x16xi32>
    %95 = arith.extui %94 : vector<8x16x16xi1> to vector<8x16x16xi32>
    %96 = arith.sitofp %95 : vector<8x16x16xi32> to vector<8x16x16xf32>
    %97 = vector.shape_cast %96 : vector<8x16x16xf32> to vector<128x16xf32>
    %c0_21 = arith.constant 0 : index
    %c0_22 = arith.constant 0 : index
    %98 = vector.load %arg6[%c0_21, %c0_22] : memref<16x32xf32, #tpu.memory_space<vmem>>, vector<16x32xf32>
    %cst_23 = arith.constant dense<0.000000e+00> : vector<128x32xf32>
    %99 = tpu.matmul %97, %98, %cst_23 {dimension_numbers = #tpu.dot_dimension_numbers<[1], [0], [0], [1], [0, 0, 1, 1], [], []>} : vector<128x16xf32>, vector<16x32xf32>, vector<128x32xf32> -> vector<128x32xf32>
    %100 = vector.shape_cast %99 : vector<128x32xf32> to vector<8x16x32xf32>
    %c0_24 = arith.constant 0 : index
    %c0_25 = arith.constant 0 : index
    %c0_26 = arith.constant 0 : index
    %101 = vector.load %arg5[%c0_24, %c0_25, %c0_26] : memref<8x16x32xf32, #tpu.memory_space<vmem>>, vector<8x16x32xf32>
    %c0_27 = arith.constant 0 : index
    %c0_28 = arith.constant 0 : index
    %102 = vector.load %arg9[%c0_27, %c0_28] : memref<1x32xf32, #tpu.memory_space<vmem>>, vector<1x32xf32>
    %103 = vector.shape_cast %102 : vector<1x32xf32> to vector<1x1x32xf32>
    %c0_29 = arith.constant 0 : index
    %c0_30 = arith.constant 0 : index
    %104 = vector.load %arg10[%c0_29, %c0_30] : memref<1x32xf32, #tpu.memory_space<vmem>>, vector<1x32xf32>
    %105 = vector.shape_cast %104 : vector<1x32xf32> to vector<1x1x32xf32>
    %cst_31 = arith.constant dense<0.000000e+00> : vector<8x16xf32>
    %106 = vector.multi_reduction <add>, %101, %cst_31 [2] : vector<8x16x32xf32> to vector<8x16xf32>
    %107 = vector.shape_cast %106 : vector<8x16xf32> to vector<8x16x1xf32>
    %cst_32 = arith.constant 3.200000e+01 : f32
    %108 = vector.broadcast %cst_32 : f32 to vector<8x16x1xf32>
    %109 = arith.divf %107, %108 : vector<8x16x1xf32>
    %110 = vector.broadcast %109 : vector<8x16x1xf32> to vector<8x16x32xf32>
    %111 = arith.subf %101, %110 : vector<8x16x32xf32>
    %112 = arith.mulf %111, %111 : vector<8x16x32xf32>
    %cst_33 = arith.constant dense<0.000000e+00> : vector<8x16xf32>
    %113 = vector.multi_reduction <add>, %112, %cst_33 [2] : vector<8x16x32xf32> to vector<8x16xf32>
    %114 = vector.shape_cast %113 : vector<8x16xf32> to vector<8x16x1xf32>
    %cst_34 = arith.constant 3.200000e+01 : f32
    %115 = vector.broadcast %cst_34 : f32 to vector<8x16x1xf32>
    %116 = arith.divf %114, %115 : vector<8x16x1xf32>
    %cst_35 = arith.constant 9.99999974E-6 : f32
    %117 = vector.broadcast %cst_35 : f32 to vector<8x16x1xf32>
    %118 = arith.addf %116, %117 : vector<8x16x1xf32>
    %119 = math.rsqrt %118 : vector<8x16x1xf32>
    %120 = vector.broadcast %119 : vector<8x16x1xf32> to vector<8x16x32xf32>
    %121 = arith.mulf %111, %120 : vector<8x16x32xf32>
    %122 = vector.broadcast %103 : vector<1x1x32xf32> to vector<8x16x32xf32>
    %123 = arith.mulf %121, %122 : vector<8x16x32xf32>
    %124 = vector.broadcast %105 : vector<1x1x32xf32> to vector<8x16x32xf32>
    %125 = arith.addf %123, %124 : vector<8x16x32xf32>
    %126 = arith.addf %125, %100 : vector<8x16x32xf32>
    %c0_36 = arith.constant 0 : index
    %c0_37 = arith.constant 0 : index
    %c0_38 = arith.constant 0 : index
    %127 = vector.load %arg12[%c0_36, %c0_37, %c0_38] : memref<8x16x32xf32, #tpu.memory_space<vmem>>, vector<8x16x32xf32>
    tpu.vector_store %arg12[%c0_36, %c0_37, %c0_38], %126 {strides = array<i32>} : memref<8x16x32xf32, #tpu.memory_space<vmem>>, vector<8x16x32xf32>,
    return
  }
  func.func @transform_0(%arg0: i32, %arg1: i32) -> (i32, i32) {
    %c0_i32 = arith.constant 0 : i32
    %c0_i32_0 = arith.constant 0 : i32
    return %arg0, %c0_i32 : i32, i32
  }
  func.func @transform_1(%arg0: i32, %arg1: i32) -> (i32, i32) {
    %c0_i32 = arith.constant 0 : i32
    %c0_i32_0 = arith.constant 0 : i32
    return %arg0, %c0_i32 : i32, i32
  }
  func.func @transform_2(%arg0: i32, %arg1: i32) -> (i32, i32, i32) {
    %c0_i32 = arith.constant 0 : i32
    %c0_i32_0 = arith.constant 0 : i32
    %c0_i32_1 = arith.constant 0 : i32
    return %arg1, %c0_i32, %c0_i32_0 : i32, i32, i32
  }
  func.func @transform_3(%arg0: i32, %arg1: i32) -> (i32, i32, i32) {
    %c0_i32 = arith.constant 0 : i32
    %c0_i32_0 = arith.constant 0 : i32
    return %arg0, %arg1, %c0_i32 : i32, i32, i32
  }
  func.func @transform_4(%arg0: i32, %arg1: i32) -> (i32, i32) {
    %c0_i32 = arith.constant 0 : i32
    %c0_i32_0 = arith.constant 0 : i32
    %c0_i32_1 = arith.constant 0 : i32
    return %c0_i32, %c0_i32_0 : i32, i32
  }
  func.func @transform_5(%arg0: i32, %arg1: i32) -> (i32, i32) {
    %c0_i32 = arith.constant 0 : i32
    %c0_i32_0 = arith.constant 0 : i32
    %c0_i32_1 = arith.constant 0 : i32
    return %c0_i32, %c0_i32_0 : i32, i32
  }
  func.func @transform_6(%arg0: i32, %arg1: i32) -> (i32, i32) {
    %c0_i32 = arith.constant 0 : i32
    %c0_i32_0 = arith.constant 0 : i32
    %c0_i32_1 = arith.constant 0 : i32
    return %c0_i32, %c0_i32_0 : i32, i32
  }
  func.func @transform_7(%arg0: i32, %arg1: i32) -> (i32, i32) {
    %c0_i32 = arith.constant 0 : i32
    %c0_i32_0 = arith.constant 0 : i32
    %c0_i32_1 = arith.constant 0 : i32
    return %c0_i32, %c0_i32_0 : i32, i32
  }
  func.func @transform_8(%arg0: i32, %arg1: i32) -> (i32, i32) {
    %c0_i32 = arith.constant 0 : i32
    %c0_i32_0 = arith.constant 0 : i32
    %c0_i32_1 = arith.constant 0 : i32
    return %c0_i32, %c0_i32_0 : i32, i32
  }
  func.func @transform_9(%arg0: i32, %arg1: i32) -> (i32, i32) {
    %c0_i32 = arith.constant 0 : i32
    %c0_i32_0 = arith.constant 0 : i32
    return %arg0, %c0_i32 : i32, i32
  }
  func.func @transform_10(%arg0: i32, %arg1: i32) -> (i32, i32, i32) {
    %c0_i32 = arith.constant 0 : i32
    %c0_i32_0 = arith.constant 0 : i32
    return %arg0, %arg1, %c0_i32 : i32, i32, i32
  }
}

</mosaic_0001>

<bundles_post_ra>
// kernel: tpu_custom_call.1
= control target key start
LH: loop header
LB: loop body
LE: loop exit
PB: predicated region body
PF: predicated region fallthrough
CT: control target
= control target key end

     0   :  { %s2629_s0 = inlined_call_operand.vmem [shape: f32[16,32], index: 0, kind: input, shape index: {}]   ;;  %s2630_s1 = inlined_call_operand.vmem [shape: f32[16,8], index: 1, kind: input, shape index: {}]   ;;  %s2631_s2 = inlined_call_operand.hbm [shape: f32[1,8,16], index: 2, kind: input, shape index: {}]   ;;  %s2632_s3 = inlined_call_operand.hbm [shape: f32[16,16,32], index: 3, kind: input, shape index: {}]   ;;  %s2633_s4 = inlined_call_operand.vmem [shape: f32[16,32], index: 4, kind: input, shape index: {}]   ;;  %s2634_s5 = inlined_call_operand.vmem [shape: f32[1,32], index: 5, kind: input, shape index: {}]   ;;  %s2635_s6 = inlined_call_operand.vmem [shape: f32[1,32], index: 6, kind: input, shape index: {}]   ;;  %s2636_s7 = inlined_call_operand.vmem [shape: f32[1,32], index: 7, kind: input, shape index: {}]   ;;  %s2637_s8 = inlined_call_operand.vmem [shape: f32[1,32], index: 8, kind: input, shape index: {}]   ;;  %s2638_s9 = inlined_call_operand.hbm [shape: f32[16,32], index: 9, kind: output, shape index: {0}]   ;;  %s2639_s10 = inlined_call_operand.hbm [shape: f32[16,16,32], index: 10, kind: output, shape index: {1}]  }
   0x1   :  { %2652 = sst [smem:[#allocation17_spill]] %s2629_s0 }
   0x2   :  { %2653 = sst [smem:[#allocation18_spill]] %s2638_s9 }
   0x3   :  { %2654 = sst [smem:[#allocation19_spill]] %s2639_s10 }
   0x4   :  { %16 = vsyncpa [#allocation3], 0 }
   0x5   :  { %17 = vsyncpa [#allocation6], 0 }
   0x6   :  { %19 = vsyncpa [#allocation6 + $0x1], 0 }
   0x7   :  { %20 = vsyncpa [#allocation4], 0 }
   0x8   :  { %22 = vsyncpa [#allocation4 + $0x1], 0 }
   0x9   :  { %23 = vsyncpa [#allocation9], 0 }
   0xa   :  { %25 = vsyncpa [#allocation9 + $0x1], 0  ;;  %s1931_s13 = smov 0   ;;  %s1933_s14 = smov 0  }
   0xb   :  { %s1935_s15 = smov 0   ;;  %s1937_s16 = smov 0  }
   0xc   :  { %s1939_s17 = smov 0   ;;  %s1941_s18 = smov 0  }
   0xd LB: > { %2655 = sst [smem:[#allocation14_spill]] %s1842_s13  ;;  %s1430_s19 = sadd.s32 4294967295, %s1862_s18   ;;  %s1862_s18 = sphi %s1941_s18, %s31_s18   ;;  %s1858_s17 = sphi %s1939_s17, %s2686_s17   ;;  %s1854_s16 = sphi %s1937_s16, %s2685_s16   ;;  %s1850_s15 = sphi %s1935_s15, %s2684_s15   ;;  %s1846_s14 = sphi %s1933_s14, %s2683_s14   ;;  %s1842_s13 = sphi %s1931_s13, %s2682_s13  }
   0xe   : > { %2656 = sst [smem:[#allocation15_spill]] %s1862_s18  ;;  %s1431_s20 = sadd.s32 4294967294, %s1862_s18  }
   0xf   : > { %p137_p0 = scmp.ne.s32.totalorder %s1850_s15, %s1846_s14  ;;  %p138_p1 = scmp.eq.s32.totalorder %s1862_s18, 0 }
  0x10   : > { %p143_p2 = scmp.ne.s32.totalorder %s1846_s14, %s1842_s13  ;;  %p1969_p3 = scmp.eq.s32.totalorder %s1430_s19, 0 }
  0x11   : > { %p272_p4 = scmp.eq.s32.totalorder %s1430_s19, 1  ;;  %p1973_p5 = por %p138_p1, %p137_p0 }
  0x12   : > { %s2657_s22 = scalar_select %p1969_p3, 1, 0 }
  0x13   : > { %p278_p6 = scmp.eq.s32.totalorder %s1431_s20, 1  ;;  %p1979_p7 = por %p1969_p3, %p143_p2 }
  0x14   : > { %p1983_p8 = por %p272_p4, %p137_p0  ;;  %p1432_p10 = scmp.ge.s32.totalorder %s1862_s18, 1 }
  0x15   : > { %s2659_s24 = scalar_select %p1979_p7, 1, 0 }
  0x16   : > { %s2660_s25 = scalar_select %p1983_p8, 1, 0 }
  0x17   : > { %p1987_p9 = por %p278_p6, %p143_p2  ;;  %p313_p11 = scmp.lt.s32.totalorder %s1862_s18, 3 }
  0x18   : > { %s1864_s28 = smov [#allocation2]   ;;  %p1588_p1 = scmp.lt.s32.totalorder %s1862_s18, 2 }
  0x19   : > { %s2661_s26 = scalar_select %p1987_p9, 1, 0 }
  0x1a   : > { %p1994_p13 = pnand %p1432_p10, %p313_p11  ;;  %s328_s29 = sshll.u32 %s1864_s28, 4  ;;  %s329_s29 = int_to_ptr.vmem [resolvable:$true] %s328_s29 }
  0x1b   : > { %2662 = sst [smem:[#allocation16_spill]] %s2661_s26  ;;  %p2003_p4 = pnand %p1588_p1, %p1973_p5 }
  0x1c   : > { %s2663_s27 = scalar_select %p1994_p13, 1, 0 }
  0x1d   : > { %p1572_p0 = pneg %p1994_p13  ;;  %s43_s12 = sadd.s32 1, %s1858_s17 }
  0x1e   : > { %s2664_s30 = scalar_select %p2003_p4, 1, 0 }
  0x1f   : > { %p2009_p2 = pnand %p1572_p0, %p1969_p3  ;;  %p2014_p6 = scmp.ge.s32.totalorder %s43_s12, 2 }
  0x20   : > { %s368_s20 = sand.u32 1, %s1850_s15   ;;  %s1686_s23 = scalar_lea.hbm %s2631_s2, 128 }
  0x21   : > { %s2666_s19 = scalar_select %p2014_p6, 1, 0 }
  0x22   : > { %p1687_p5 = scmp.ne.s32.totalorder %s2631_s2, %s1686_s23  ;;  %p1688_p10 = pneg %p2009_p2 }
  0x23   : > { %p1693_p0 = scmp.lt.u32.totalorder %s1686_s23, %s2631_s2 }
  0x24   : > { %p1689_p11 = pnand %p1688_p10, %p1687_p5 }
  0x26   : > { %p1690_p1 = pneg %p1689_p11 }
  0x28   : > { %p1695_p12 = pnand %p1693_p0, %p1690_p1 }
  0x2a   : > { %1698 = shalt.err (!%p1695_p12)
}
  0x2b   : > { %s1699_s9 = scalar_lea.vmem %s329_s29, 128  ;;  %p1707_p3 = scmp.lt.s32.totalorder %s329_s29, %s329_s29 }
  0x2c   : > { %p1700_p9 = scmp.ne.s32.totalorder %s329_s29, %s1699_s9  ;;  %p1708_p13 = scmp.lt.s32.totalorder %s1699_s9, %s1699_s9 }
  0x2e   : > { %p1702_p8 = pnand %p1700_p9, %p1688_p10  ;;  %p1709_p4 = por %p1708_p13, %p1707_p3 }
  0x30   : > { %p1703_p7 = pneg %p1702_p8 }
  0x32   : > { %p1710_p6 = pnand %p1709_p4, %p1703_p7 }
  0x34   : > { %1713 = shalt.err (!%p1710_p6)
}
  0x35   : > { %1575 = dma.hbm_to_vmem [thread:$0]  (!%p2009_p2), %s2631_s2, 128, %s329_s29, [#allocation3]  }
  0x36   : > { %p2667_p9 = scmp.ne.s32.totalorder %s2666_s19, 0  ;;  %s1435_s9 = sshll.u32 %s368_s20, 7 }
  0x37   : > { %s1507_s13 = sshll.u32 %s1858_s17, 11  ;;  %s372_s23 = scalar_lea.vmem [#allocation5], %s1435_s9 }
  0x38   : > { %s2688_s12 = smov (%p2667_p9, %s43_s12), 0  ;;  %s2045_s28 = scalar_lea.hbm %s2632_s3, %s1507_s13 }
  0x39   : > { %s125_s10 = ssub.s32 %s1858_s17, %s2688_s12  ;;  %s382_s18 = sshll.u32 %s372_s23, 4  ;;  %s2052_s18 = int_to_ptr.vmem [resolvable:$true] %s382_s18 }
  0x3a   : > { %p128_p3 = scmp.eq.s32.totalorder %s125_s10, 0  ;;  %s2668_s29 = sadd.s32 1, %s1850_s15 }
  0x3b   : > { %s2054_s21 = scalar_lea.sflag [#allocation6], %s368_s20  ;;  %s1714_s10 = scalar_lea.hbm %s2045_s28, 2048 }
  0x3c   : > { %s2050_s19 = scalar_select %p128_p3, %s1850_s15, %s2668_s29  }
  0x3d   : > { %p1715_p7 = scmp.ne.s32.totalorder %s2045_s28, %s1714_s10  ;;  %p2669_p8 = scmp.ne.s32.totalorder %s2664_s30, 0 }
  0x3e   : > { %s1719_s9 = scalar_lea.hbm %s2632_s3, 4096  ;;  %p1720_p2 = scmp.lt.u32.totalorder %s2045_s28, %s2632_s3 }
  0x3f   : > { %p1716_p12 = pneg %p2669_p8  ;;  %p1721_p6 = scmp.lt.u32.totalorder %s1719_s9, %s1714_s10 }
  0x40   : > { %p1723_p10 = scmp.lt.u32.totalorder %s1714_s10, %s2045_s28 }
  0x41   : > { %p1717_p13 = pnand %p1716_p12, %p1715_p7  ;;  %p1722_p5 = por %p1721_p6, %p1720_p2 }
  0x43   : > { %p1718_p4 = pneg %p1717_p13  ;;  %p1724_p11 = por %p1723_p10, %p1722_p5 }
  0x45   : > { %p1725_p1 = pnand %p1724_p11, %p1718_p4 }
  0x47   : > { %1728 = shalt.err (!%p1725_p1)
}
  0x48   : > { %s1729_s20 = scalar_lea.vmem %s2052_s18, 2048  ;;  %s1865_s29 = smov [#allocation5]  }
  0x49   : > { %p1730_p0 = scmp.ne.s32.totalorder %s2052_s18, %s1729_s20  ;;  %s1734_s13 = sshll.u32 %s1865_s29, 4  ;;  %s1735_s13 = int_to_ptr.vmem [resolvable:$false] %s1734_s13 }
  0x4a   : > { %s1736_s26 = scalar_lea.vmem %s1735_s13, 4096  ;;  %p1737_p7 = scmp.lt.s32.totalorder %s2052_s18, %s1735_s13 }
  0x4b   : > { %p1732_p9 = pnand %p1730_p0, %p1716_p12  ;;  %p1738_p13 = scmp.lt.s32.totalorder %s1736_s26, %s1729_s20 }
  0x4d   : > { %p1733_p3 = pneg %p1732_p9  ;;  %p1739_p2 = por %p1738_p13, %p1737_p7 }
  0x4f   : > { %p1740_p6 = pnand %p1739_p2, %p1733_p3 }
  0x51   : > { %1743 = shalt.err (!%p1740_p6)
}
  0x52   : > { %s1866_s10 = smov 128   ;;  %s1867_s9 = smov 8  }
  0x53   : > { %1579 = dma.hbm_to_vmem [thread:$0]  (!%p2669_p8), %s2045_s28, 2048, %s2052_s18, %s2054_s21, %s1866_s10, %s1866_s10, %s1867_s9  }
  0x54   : > { %p2670_p12 = scmp.ne.s32.totalorder %s2663_s27, 0 }
  0x55   : > { %p2671_p4 = scmp.ne.s32.totalorder (!%p2670_p12), %s2657_s22, 0 }
  0x56   : > { %394 = sbr.rel (%p2670_p12) target bundleno = 726 (0x2d6), region = 56 }
  0x5d   : > { %1825 = dma.done.wait (%p2671_p4), [#allocation3], 128  }
  0x5e   : > { %1827 = vsyncadd (%p2671_p4), [#allocation3], 4294967168  ;;  %s2089_s11 = sand.u32 1, %s1846_s14   ;;  %p2672_p8 = scmp.ne.s32.totalorder %s2659_s24, 0 }
  0x5f   : > { %s1441_s23 = sshll.u32 %s2089_s11, 7  ;;  %s401_s20 = scalar_lea.sflag [#allocation6], %s2089_s11 }
  0x60   : > { %s2095_s30 = scalar_lea.vmem [#allocation5], %s1441_s23 }
  0x61   : > { %1829 = dma.done.wait (%p2672_p8), %s401_s20, 2048  }
  0x62   : > { %1831 = vsyncadd (%p2672_p8), %s401_s20, 4294965248  ;;  %p454_p5 = scmp.lt.s32.totalorder %s1854_s16, 1  ;;  %v1868_v0 = vmov 0   ;;  %v1869_v1 = vmov 2   ;;  %v1870_v3 = vmov 1   ;;  %v510_v4 = vlaneseq  ;;  %v504_v8 = vld [vmem:[#allocation2] sm:$0xff] }
  0x63   : > { %1648 = vset.pattern.permute.xlu0 %v1868_v0  ;;  %1650 = vset.pattern.permute.xlu1 %v1869_v1  ;;  %v738_v47 = vld [vmem:[%s2633_s4] sm:$0xff]  ;;  %v739_v48 = vld [vmem:[%s2633_s4 + $0x8] sm:$0xff]  ;;  %s2673_s0 = sld [smem:[#allocation17_spill]]  ;;  %s2443_s18 = scalar_lea.vmem [#allocation8], %s1441_s23 }
  0x64   : > { %s2104_s22 = scalar_select %p454_p5, %s1854_s16, 1  ;;  %v2113_v5 = vshrl.u32 %v510_v4, 7  ;;  %v1556_v50 = vpack.c.bf16 %v739_v48, %v738_v47  ;;  %v1871_v48 = vmov 0.0  }
  0x65   : > { %s1442_s23 = sshll.u32 %s2089_s11, 3  ;;  %s1500_s29 = sshll.u32 %s1854_s16, 7 }
  0x66   : > { %s1444_s27 = sshll.u32 %s2104_s22, 3  ;;  %v512_v6 = vsub.s32 0, %v2113_v5  ;;  %v533_v7 = vsub.s32 2, %v2113_v5  ;;  %v522_v9 = vsub.s32 1, %v2113_v5  ;;  %1557 = vmatprep.subr.bf16.mxu0 %v1556_v50  ;;  %1560 = vmatprep.subr.bf16.mxu1 %v1556_v50  ;;  %v632_v58 = vsub.s32 4, %v2113_v5  ;;  %s446_s10 = scalar_lea.vmem [#allocation7], %s1442_s23 }
  0x67   : > { %s461_s21 = scalar_lea.vmem %s2630_s1, %s1444_s27  ;;  %1559 = vmatpush3.bf16.msra.mxu0 %v1556_v50  ;;  %1561 = vmatpush3.bf16.msra.mxu1 %v1556_v50  ;;  %v643_v61 = vsub.s32 5, %v2113_v5  ;;  %s1257_s9 = sshll.u32 %s446_s10, 4  ;;  %s2544_s9 = int_to_ptr.vmem [resolvable:$true] %s1257_s9 }
  0x68   : > { %v503_v2 = vld [vmem:[%s461_s21] sm:$0xff]  ;;  %v513_v10 = vrot.slane %v504_v8, %v512_v6  ;;  %v534_v12 = vrot.slane %v504_v8, %v533_v7  ;;  %v523_v14 = vrot.slane %v504_v8, %v522_v9  ;;  %v2157_v8 = vld [vmem:[%s2095_s30] sm:$0xff]  ;;  %s2674_s28 = sld [smem:[#allocation18_spill]]  ;;  %s2675_s24 = sld [smem:[#allocation19_spill]] }
  0x69   : > { %507 = vperm.xlu0 %1648, %v503_v2   ;;  %528 = vperm.xlu1 %1650, %v503_v2   ;;  %s457_s20 = scalar_lea.vmem %s2673_s0, %s1444_s27  ;;  %s1744_s26 = scalar_lea.vmem %s2544_s9, 128 }
  0x6a   : > { %p1745_p10 = scmp.ne.s32.totalorder %s2544_s9, %s1744_s26  ;;  %p2676_p11 = scmp.ne.s32.totalorder %s2660_s25, 0 }
  0x6b   : > { %s1872_s22 = smov [#allocation7]  }
  0x6c   : > { %p1746_p1 = pnand %p1745_p10, %p2676_p11  ;;  %s1748_s27 = sshll.u32 %s1872_s22, 4  ;;  %s1749_s27 = int_to_ptr.vmem [resolvable:$false] %s1748_s27 }
  0x6d   : > { %1649 = vset.pattern.permute.xlu0 %v1870_v3  ;;  %s1750_s0 = scalar_lea.vmem %s1749_s27, 256  ;;  %p1751_p9 = scmp.lt.s32.totalorder %s2544_s9, %s1749_s27 }
  0x6e   : > { %517 = vperm.xlu0 %1649, %v503_v2   ;;  %s2540_s21 = scalar_lea.hbm %s2674_s28, %s1500_s29  ;;  %s1239_s29 = scalar_lea.sflag [#allocation4], %s2089_s11 }
  0x6f   : > { %p1747_p0 = pneg %p1746_p1  ;;  %p1752_p3 = scmp.lt.s32.totalorder %s1750_s0, %s1744_s26 }
  0x71   : > { %p1753_p7 = por %p1752_p3, %p1751_p9 }
  0x72   : > { %1651 = vset.pattern.permute.xlu0 %v1869_v1  ;;  %v654_v1 = vsub.s32 6, %v2113_v5 }
  0x73   : > { %p1754_p13 = pnand %p1753_p7, %p1747_p0 }
  0xe8   : > { %v508_v11 = vpop.permute.xlu0 %507  ;;  %v529_v13 = vpop.permute.xlu1 %528 }
  0xe9   : > { %v514_v15 = vsub.f32 %v508_v11, %v513_v10  ;;  %v535_v16 = vsub.f32 %v529_v13, %v534_v12  ;;  %v2162_v10 = vld [vmem:[%s2095_s30 + $0x10] sm:$0xff]  ;;  %v2167_v11 = vld [vmem:[%s2095_s30 + $0x18] sm:$0xff]  ;;  %v2172_v13 = vld [vmem:[%s2095_s30 + $0x28] sm:$0xff] }
  0xeb   : > { %v515_v19 = vmul.f32 %v514_v15, %v514_v15  ;;  %v536_v21 = vmul.f32 %v535_v16, %v535_v16 }
  0xed   : > { %v518_v17 = vpop.permute.xlu0 %517 }
  0xee   : > { %v524_v18 = vsub.f32 %v518_v17, %v523_v14  ;;  %v2175_v14 = vld [vmem:[%s2095_s30 + $0x8] sm:$0xff]  ;;  %v2182_v17 = vld [vmem:[%s2095_s30 + $0x38] sm:$0xff] }
  0xf0   : > { %v525_v20 = vmul.f32 %v524_v18, %v524_v18  ;;  %v2185_v18 = vld [vmem:[%s2095_s30 + $0x20] sm:$0xff] }
  0xf2   : > { %v526_v22 = vadd.f32 %v525_v20, %v515_v19 }
  0xf4   : > { %v537_v23 = vadd.f32 %v536_v21, %v526_v22  ;;  %v2192_v21 = vld [vmem:[%s2095_s30 + $0x48] sm:$0xff]  ;;  %v2195_v22 = vld [vmem:[%s2095_s30 + $0x30] sm:$0xff] }
  0xf6   : > { %vm538_vm0 = vcmp.gt.f32.partialorder %v537_v23, 10.5625  ;;  %vm540_vm1 = vcmp.gt.f32.partialorder %v537_v23, 20.25  ;;  %vm543_vm2 = vcmp.gt.f32.partialorder %v537_v23, 33.0625  ;;  %vm546_vm3 = vcmp.gt.f32.partialorder %v537_v23, 49.0 }
  0xf7   : > { %v539_v24 = vsel %vm538_vm0, 1, %v1868_v0  ;;  %v541_v25 = vsel %vm540_vm1, 1, %v1868_v0  ;;  %v544_v27 = vsel %vm543_vm2, 1, %v1868_v0  ;;  %vm549_vm4 = vcmp.gt.f32.partialorder %v537_v23, 68.0625 }
  0xf8   : > { %v542_v26 = vadd.s32 %v541_v25, %v539_v24  ;;  %v547_v29 = vsel %vm546_vm3, 1, %v1868_v0  ;;  %vm552_vm5 = vcmp.gt.f32.partialorder %v537_v23, 90.25  ;;  %v550_v31 = vsel %vm549_vm4, 1, %v1868_v0  ;;  %v2202_v25 = vld [vmem:[%s2095_s30 + $0x58] sm:$0xff] }
  0xf9   : > { %vm555_vm6 = vcmp.gt.f32.partialorder %v537_v23, 115.5625  ;;  %v553_v33 = vsel %vm552_vm5, 1, %v1868_v0  ;;  %vm558_vm7 = vcmp.gt.f32.partialorder %v537_v23, 144.0  ;;  %vm561_vm8 = vcmp.gt.f32.partialorder %v537_v23, 175.5625 }
  0xfa   : > { %v545_v28 = vadd.s32 %v544_v27, %v542_v26  ;;  %v556_v35 = vsel %vm555_vm6, 1, %v1868_v0  ;;  %v559_v37 = vsel %vm558_vm7, 1, %v1868_v0  ;;  %vm564_vm9 = vcmp.gt.f32.partialorder %v537_v23, 210.25  ;;  %v2205_v26 = vld [vmem:[%s2095_s30 + $0x40] sm:$0xff] }
  0xfb   : > { %v562_v39 = vsel %vm561_vm8, 1, %v1868_v0  ;;  %vm567_vm10 = vcmp.gt.f32.partialorder %v537_v23, 248.0625  ;;  %v565_v41 = vsel %vm564_vm9, 1, %v1868_v0  ;;  %vm570_vm11 = vcmp.gt.f32.partialorder %v537_v23, 289.0 }
  0xfc   : > { %v548_v30 = vadd.s32 %v547_v29, %v545_v28  ;;  %v568_v43 = vsel %vm567_vm10, 1, %v1868_v0  ;;  %vm573_vm12 = vcmp.gt.f32.partialorder %v537_v23, 333.0625  ;;  %v571_v45 = vsel %vm570_vm11, 1, %v1868_v0  ;;  %v2212_v29 = vld [vmem:[%s2095_s30 + $0x68] sm:$0xff] }
  0xfd   : > { %vm576_vm13 = vcmp.gt.f32.partialorder %v537_v23, 380.25  ;;  %v574_v49 = vsel %vm573_vm12, 1, %v1868_v0  ;;  %vm579_vm14 = vcmp.gt.f32.partialorder %v537_v23, 430.5625  ;;  %vm582_vm15 = vcmp.lt.f32.partialorder %v537_v23, 1e+16 }
  0xfe   : > { %v551_v32 = vadd.s32 %v550_v31, %v548_v30  ;;  %v577_v52 = vsel %vm576_vm13, 1, %v1868_v0  ;;  %v580_v54 = vsel %vm579_vm14, 1, %v1868_v0  ;;  %v621_v0 = vsub.s32 3, %v2113_v5  ;;  %v2215_v30 = vld [vmem:[%s2095_s30 + $0x50] sm:$0xff] }
  0xff   : > { %vm473_vm0 = vcmask 261120   ;;  %vm740_vm1 = vcmask 130048  }
 0x100   : > { %v554_v34 = vadd.s32 %v553_v33, %v551_v32  ;;  %v962_v12 = vsel %vm473_vm0, %v2167_v11, 0.0  ;;  %v968_v15 = vsel %vm473_vm0, %v2172_v13, 0.0  ;;  %v956_v16 = vsel %vm473_vm0, %v2175_v14, 0.0  ;;  %v2222_v33 = vld [vmem:[%s2095_s30 + $0x78] sm:$0xff] }
 0x101   : > { %v974_v19 = vsel %vm473_vm0, %v2182_v17, 0.0  ;;  %v965_v20 = vsel %vm473_vm0, %v2185_v18, 0.0  ;;  %v980_v23 = vsel %vm473_vm0, %v2192_v21, 0.0  ;;  %v971_v24 = vsel %vm473_vm0, %v2195_v22, 0.0 }
 0x102   : > { %v557_v36 = vadd.s32 %v556_v35, %v554_v34  ;;  %v986_v27 = vsel %vm473_vm0, %v2202_v25, 0.0  ;;  %v977_v28 = vsel %vm473_vm0, %v2205_v26, 0.0  ;;  %v992_v31 = vsel %vm473_vm0, %v2212_v29, 0.0  ;;  %v2225_v34 = vld [vmem:[%s2095_s30 + $0x60] sm:$0xff] }
 0x103   : > { %v983_v32 = vsel %vm473_vm0, %v2215_v30, 0.0  ;;  %v998_v35 = vsel %vm473_vm0, %v2222_v33, 0.0 }
 0x104   : > { %v560_v38 = vadd.s32 %v559_v37, %v557_v36  ;;  %v989_v36 = vsel %vm473_vm0, %v2225_v34, 0.0  ;;  %v2232_v37 = vld [vmem:[%s2095_s30 + $0x70] sm:$0xff]  ;;  %s1273_s30 = sshll.u32 %s2443_s18, 4  ;;  %s2554_s30 = int_to_ptr.vmem [resolvable:$true] %s1273_s30 }
 0x106   : > { %v563_v40 = vadd.s32 %v562_v39, %v560_v38  ;;  %v995_v38 = vsel %vm473_vm0, %v2232_v37, 0.0  ;;  %v2241_v39 = vld [vmem:[%s457_s20] sm:$0xff]  ;;  %s1509_s20 = sshll.u32 %s1854_s16, 11 }
 0x107   : > { %s2552_s13 = scalar_lea.hbm %s2675_s24, %s1509_s20 }
 0x108   : > { %v566_v42 = vadd.s32 %v565_v41, %v563_v40  ;;  %v474_v40 = vsel %vm473_vm0, %v2241_v39, 0.0  ;;  %v2246_v41 = vand.u32 127, %v510_v4 }
 0x10a   : > { %v569_v44 = vadd.s32 %v568_v43, %v566_v42 }
 0x10c   : > { %v572_v46 = vadd.s32 %v571_v45, %v569_v44 }
 0x10e   : > { %v575_v51 = vadd.s32 %v574_v49, %v572_v46 }
 0x110   : > { %v578_v53 = vadd.s32 %v577_v52, %v575_v51 }
 0x112   : > { %v581_v55 = vadd.s32 %v580_v54, %v578_v53 }
 0x114   : > { %v583_v56 = vsel %vm582_vm15, %v581_v55, 0 }
 0x115   : > { %v589_v57 = vrot.slane %v583_v56, %v512_v6  ;;  %v600_v59 = vrot.slane %v583_v56, %v522_v9  ;;  %v633_v60 = vrot.slane %v583_v56, %v632_v58  ;;  %v611_v62 = vrot.slane %v583_v56, %v533_v7 }
 0x116   : > { %v644_v63 = vrot.slane %v583_v56, %v643_v61  ;;  %v622_v2 = vrot.slane %v583_v56, %v621_v0  ;;  %v655_v3 = vrot.slane %v583_v56, %v654_v1  ;;  %v665_v6 = vsub.s32 7, %v2113_v5 }
 0x117   : > { %595 = vbcast.lane.b32.xlu0 %v589_v57, 264  ;;  %591 = vbcast.lane.b32.xlu1 %v589_v57, 256  ;;  %v953_v9 = vsel %vm473_vm0, %v2157_v8, 0.0  ;;  %v959_v5 = vsel %vm473_vm0, %v2162_v10, 0.0 }
 0x118   : > { %v666_v7 = vrot.slane %v583_v56, %v665_v6 }
 0x11b   : > { %602 = vbcast.lane.b32.xlu0 %v600_v59, 256  ;;  %635 = vbcast.lane.b32.xlu1 %v633_v60, 256 }
 0x11f   : > { %606 = vbcast.lane.b32.xlu0 %v600_v59, 264  ;;  %639 = vbcast.lane.b32.xlu1 %v633_v60, 264 }
 0x123   : > { %613 = vbcast.lane.b32.xlu0 %v611_v62, 256  ;;  %646 = vbcast.lane.b32.xlu1 %v644_v63, 256 }
 0x127   : > { %617 = vbcast.lane.b32.xlu0 %v611_v62, 264  ;;  %650 = vbcast.lane.b32.xlu1 %v644_v63, 264 }
 0x12b   : > { %624 = vbcast.lane.b32.xlu0 %v622_v2, 256  ;;  %657 = vbcast.lane.b32.xlu1 %v655_v3, 256 }
 0x12f   : > { %628 = vbcast.lane.b32.xlu0 %v622_v2, 264  ;;  %661 = vbcast.lane.b32.xlu1 %v655_v3, 264 }
 0x133   : > { %668 = vbcast.lane.b32.xlu1 %v666_v7, 256 }
 0x137   : > { %672 = vbcast.lane.b32.xlu1 %v666_v7, 264 }
 0x14e   : > { %954 = vadd.xlane.f32.xlu0 %v953_v9 }
 0x152   : > { %960 = vadd.xlane.f32.xlu0 %v959_v5 }
 0x156   : > { %963 = vadd.xlane.f32.xlu0 %v962_v12 }
 0x15a   : > { %969 = vadd.xlane.f32.xlu0 %v968_v15 }
 0x15b   : > { %957 = vadd.xlane.f32.xlu1 %v956_v16 }
 0x15e   : > { %975 = vadd.xlane.f32.xlu0 %v974_v19 }
 0x15f   : > { %966 = vadd.xlane.f32.xlu1 %v965_v20 }
 0x162   : > { %981 = vadd.xlane.f32.xlu0 %v980_v23 }
 0x163   : > { %972 = vadd.xlane.f32.xlu1 %v971_v24 }
 0x166   : > { %987 = vadd.xlane.f32.xlu0 %v986_v27 }
 0x167   : > { %978 = vadd.xlane.f32.xlu1 %v977_v28 }
 0x16a   : > { %993 = vadd.xlane.f32.xlu0 %v992_v31 }
 0x16b   : > { %984 = vadd.xlane.f32.xlu1 %v983_v32 }
 0x16e   : > { %999 = vadd.xlane.f32.xlu0 %v998_v35 }
 0x16f   : > { %990 = vadd.xlane.f32.xlu1 %v989_v36 }
 0x173   : > { %996 = vadd.xlane.f32.xlu1 %v995_v38 }
 0x177   : > { %475 = vadd.xlane.f32.xlu1 %v474_v40 }
 0x189   : > { %v596_v42 = vpop.permute.xlu0 %595  ;;  %v592_v43 = vpop.permute.xlu1 %591 }
 0x18a   : > { %v1449_v44 = vadd.s32 4294967295, %v596_v42  ;;  %v1448_v45 = vadd.s32 4294967295, %v592_v43 }
 0x18c   : > { %vm691_vm2 = vcmp.eq.s32.totalorder %v1449_v44, %v2246_v41  ;;  %vm690_vm3 = vcmp.eq.s32.totalorder %v1448_v45, %v2246_v41 }
 0x18d   : > { %v603_v46 = vpop.permute.xlu0 %602  ;;  %v636_v47 = vpop.permute.xlu1 %635  ;;  %v1464_v49 = vsel %vm690_vm3, 1.0, %v1871_v48  ;;  %v1465_v50 = vsel %vm691_vm2, 1.0, %v1871_v48 }
 0x18e   : > { %v1450_v51 = vadd.s32 4294967295, %v603_v46  ;;  %v1456_v52 = vadd.s32 4294967295, %v636_v47  ;;  %1532 = vmatprep.mubr.msk.f32.mxu0 %vm740_vm1, %v1464_v49 }
 0x18f   : > { %1533 = vmatmul.mubr.msk.f32.vlgmr.msra.gmra.mrb[0].mxu0 %vm740_vm1, %v1465_v50 }
 0x190   : > { %vm692_vm4 = vcmp.eq.s32.totalorder %v1450_v51, %v2246_v41  ;;  %vm698_vm5 = vcmp.eq.s32.totalorder %v1456_v52, %v2246_v41 }
 0x191   : > { %v607_v4 = vpop.permute.xlu0 %606  ;;  %v640_v53 = vpop.permute.xlu1 %639  ;;  %v1466_v54 = vsel %vm692_vm4, 1.0, %v1871_v48  ;;  %v1472_v55 = vsel %vm698_vm5, 1.0, %v1871_v48 }
 0x192   : > { %v1451_v56 = vadd.s32 4294967295, %v607_v4  ;;  %v1457_v57 = vadd.s32 4294967295, %v640_v53  ;;  %1535 = vmatprep.mubr.msk.f32.mxu0 %vm740_vm1, %v1466_v54  ;;  %1544 = vmatprep.mubr.msk.f32.mxu1 %vm740_vm1, %v1472_v55 }
 0x194   : > { %vm693_vm6 = vcmp.eq.s32.totalorder %v1451_v56, %v2246_v41  ;;  %vm699_vm7 = vcmp.eq.s32.totalorder %v1457_v57, %v2246_v41 }
 0x195   : > { %v614_v58 = vpop.permute.xlu0 %613  ;;  %v647_v59 = vpop.permute.xlu1 %646  ;;  %v1467_v60 = vsel %vm693_vm6, 1.0, %v1871_v48  ;;  %v1473_v61 = vsel %vm699_vm7, 1.0, %v1871_v48 }
 0x196   : > { %v1452_v62 = vadd.s32 4294967295, %v614_v58  ;;  %v1458_v63 = vadd.s32 4294967295, %v647_v59  ;;  %1536 = vmatmul.mubr.msk.f32.gmra.mrb[2].mxu0 %vm740_vm1, %v1467_v60  ;;  %1545 = vmatmul.mubr.msk.f32.vlgmr.msra.gmra.mrb[0].mxu1 %vm740_vm1, %v1473_v61 }
 0x198   : > { %vm694_vm8 = vcmp.eq.s32.totalorder %v1452_v62, %v2246_v41  ;;  %vm700_vm9 = vcmp.eq.s32.totalorder %v1458_v63, %v2246_v41 }
 0x199   : > { %v618_v0 = vpop.permute.xlu0 %617  ;;  %v651_v1 = vpop.permute.xlu1 %650  ;;  %v1468_v2 = vsel %vm694_vm8, 1.0, %v1871_v48  ;;  %v1474_v3 = vsel %vm700_vm9, 1.0, %v1871_v48 }
 0x19a   : > { %v1453_v6 = vadd.s32 4294967295, %v618_v0  ;;  %v1459_v7 = vadd.s32 4294967295, %v651_v1  ;;  %1538 = vmatprep.mubr.msk.f32.mxu0 %vm740_vm1, %v1468_v2  ;;  %1547 = vmatprep.mubr.msk.f32.mxu1 %vm740_vm1, %v1474_v3 }
 0x19c   : > { %vm695_vm10 = vcmp.eq.s32.totalorder %v1453_v6, %v2246_v41  ;;  %vm701_vm11 = vcmp.eq.s32.totalorder %v1459_v7, %v2246_v41 }
 0x19d   : > { %v625_v9 = vpop.permute.xlu0 %624  ;;  %v658_v5 = vpop.permute.xlu1 %657  ;;  %v1469_v12 = vsel %vm695_vm10, 1.0, %v1871_v48  ;;  %v1475_v15 = vsel %vm701_vm11, 1.0, %v1871_v48 }
 0x19e   : > { %v1454_v16 = vadd.s32 4294967295, %v625_v9  ;;  %v1460_v19 = vadd.s32 4294967295, %v658_v5  ;;  %1539 = vmatmul.mubr.msk.f32.gmra.mrb[4].mxu0 %vm740_vm1, %v1469_v12  ;;  %1548 = vmatmul.mubr.msk.f32.gmra.mrb[2].mxu1 %vm740_vm1, %v1475_v15 }
 0x1a0   : > { %vm696_vm12 = vcmp.eq.s32.totalorder %v1454_v16, %v2246_v41  ;;  %vm702_vm13 = vcmp.eq.s32.totalorder %v1460_v19, %v2246_v41 }
 0x1a1   : > { %v629_v20 = vpop.permute.xlu0 %628  ;;  %v662_v23 = vpop.permute.xlu1 %661  ;;  %v1470_v24 = vsel %vm696_vm12, 1.0, %v1871_v48  ;;  %v1476_v27 = vsel %vm702_vm13, 1.0, %v1871_v48 }
 0x1a2   : > { %v1455_v28 = vadd.s32 4294967295, %v629_v20  ;;  %v1461_v31 = vadd.s32 4294967295, %v662_v23  ;;  %1541 = vmatprep.mubr.msk.f32.mxu0 %vm740_vm1, %v1470_v24  ;;  %1550 = vmatprep.mubr.msk.f32.mxu1 %vm740_vm1, %v1476_v27 }
 0x1a4   : > { %vm697_vm14 = vcmp.eq.s32.totalorder %v1455_v28, %v2246_v41  ;;  %vm703_vm15 = vcmp.eq.s32.totalorder %v1461_v31, %v2246_v41 }
 0x1a5   : > { %v669_v32 = vpop.permute.xlu1 %668  ;;  %v1471_v35 = vsel %vm697_vm14, 1.0, %v1871_v48  ;;  %v1477_v36 = vsel %vm703_vm15, 1.0, %v1871_v48 }
 0x1a6   : > { %v1462_v38 = vadd.s32 4294967295, %v669_v32  ;;  %1542 = vmatmul.mubr.msk.f32.gmra.mrb[6].mxu0 %vm740_vm1, %v1471_v35  ;;  %1551 = vmatmul.mubr.msk.f32.gmra.mrb[4].mxu1 %vm740_vm1, %v1477_v36 }
 0x1a8   : > { %vm704_vm2 = vcmp.eq.s32.totalorder %v1462_v38, %v2246_v41 }
 0x1a9   : > { %v673_v40 = vpop.permute.xlu1 %672  ;;  %v1478_v42 = vsel %vm704_vm2, 1.0, %v1871_v48 }
 0x1aa   : > { %v1463_v43 = vadd.s32 4294967295, %v673_v40  ;;  %1553 = vmatprep.mubr.msk.f32.mxu1 %vm740_vm1, %v1478_v42 }
 0x1ac   : > { %vm705_vm3 = vcmp.eq.s32.totalorder %v1463_v43, %v2246_v41 }
 0x1ad   : > { %v1479_v44 = vsel %vm705_vm3, 1.0, %v1871_v48 }
 0x1ae   : > { %1554 = vmatmul.mubr.msk.f32.gmra.mrb[6].mxu1 %vm740_vm1, %v1479_v44 }
 0x1db   : > { %v955_v45 = vpop.xlane.xlu0 %954 }
 0x1dc   : > { %v1002_v46 = vmul.f32 0.03125, %v955_v45 }
 0x1de   : > { %v2297_v47 = vsub.f32 %v2157_v8, %v1002_v46 }
 0x1df   : > { %v961_v49 = vpop.xlane.xlu0 %960 }
 0x1e0   : > { %v1004_v50 = vmul.f32 0.03125, %v961_v49  ;;  %v1034_v51 = vmul.f32 %v2297_v47, %v2297_v47 }
 0x1e2   : > { %v2302_v52 = vsub.f32 %v2162_v10, %v1004_v50  ;;  %v1050_v4 = vsel %vm473_vm0, %v1034_v51, 0.0 }
 0x1e3   : > { %1051 = vadd.xlane.f32.xlu0 %v1050_v4  ;;  %v964_v41 = vpop.xlane.xlu0 %963 }
 0x1e4   : > { %v1036_v48 = vmul.f32 %v2302_v52, %v2302_v52  ;;  %v1005_v53 = vmul.f32 0.03125, %v964_v41 }
 0x1e6   : > { %v1056_v54 = vsel %vm473_vm0, %v1036_v48, 0.0  ;;  %v2309_v56 = vsub.f32 %v2167_v11, %v1005_v53 }
 0x1e7   : > { %1057 = vadd.xlane.f32.xlu0 %v1056_v54  ;;  %v970_v8 = vpop.xlane.xlu0 %969 }
 0x1e8   : > { %v958_v55 = vpop.xlane.xlu1 %957  ;;  %v1007_v58 = vmul.f32 0.03125, %v970_v8  ;;  %v1037_v61 = vmul.f32 %v2309_v56, %v2309_v56 }
 0x1e9   : > { %v1003_v57 = vmul.f32 0.03125, %v958_v55 }
 0x1ea   : > { %v2317_v63 = vsub.f32 %v2172_v13, %v1007_v58  ;;  %v1059_v6 = vsel %vm473_vm0, %v1037_v61, 0.0 }
 0x1eb   : > { %v2312_v10 = vsub.f32 %v2175_v14, %v1003_v57  ;;  %v976_v59 = vpop.xlane.xlu0 %975 }
 0x1ec   : > { %v967_v60 = vpop.xlane.xlu1 %966  ;;  %v1009_v1 = vmul.f32 0.03125, %v976_v59  ;;  %v1039_v12 = vmul.f32 %v2317_v63, %v2317_v63 }
 0x1ed   : > { %v1006_v62 = vmul.f32 0.03125, %v967_v60  ;;  %v1035_v0 = vmul.f32 %v2312_v10, %v2312_v10 }
 0x1ee   : > { %v2327_v5 = vsub.f32 %v2182_v17, %v1009_v1  ;;  %v1065_v27 = vsel %vm473_vm0, %v1039_v12, 0.0 }
 0x1ef   : > { %v2322_v11 = vsub.f32 %v2185_v18, %v1006_v62  ;;  %v1053_v2 = vsel %vm473_vm0, %v1035_v0, 0.0  ;;  %v982_v14 = vpop.xlane.xlu0 %981 }
 0x1f0   : > { %v973_v3 = vpop.xlane.xlu1 %972  ;;  %1054 = vadd.xlane.f32.xlu1 %v1053_v2  ;;  %v1011_v7 = vmul.f32 0.03125, %v982_v14 }
 0x1f1   : > { %v1008_v9 = vmul.f32 0.03125, %v973_v3  ;;  %v1038_v13 = vmul.f32 %v2322_v11, %v2322_v11 }
 0x1f2   : > { %v2338_v20 = vsub.f32 %v2192_v21, %v1011_v7 }
 0x1f3   : > { %v2334_v18 = vsub.f32 %v2195_v22, %v1008_v9  ;;  %v1062_v15 = vsel %vm473_vm0, %v1038_v13, 0.0  ;;  %v988_v16 = vpop.xlane.xlu0 %987  ;;  %v1041_v22 = vmul.f32 %v2327_v5, %v2327_v5 }
 0x1f4   : > { %1063 = vadd.xlane.f32.xlu0 %v1062_v15  ;;  %v979_v19 = vpop.xlane.xlu1 %978  ;;  %1060 = vadd.xlane.f32.xlu1 %v1059_v6  ;;  %v1013_v17 = vmul.f32 0.03125, %v988_v16  ;;  %v1043_v36 = vmul.f32 %v2338_v20, %v2338_v20 }
 0x1f5   : > { %v1010_v23 = vmul.f32 0.03125, %v979_v19  ;;  %v1040_v24 = vmul.f32 %v2334_v18, %v2334_v18  ;;  %v1071_v42 = vsel %vm473_vm0, %v1041_v22, 0.0 }
 0x1f6   : > { %v2350_v21 = vsub.f32 %v2202_v25, %v1013_v17  ;;  %v1077_v25 = vsel %vm473_vm0, %v1043_v36, 0.0 }
 0x1f7   : > { %v2346_v28 = vsub.f32 %v2205_v26, %v1010_v23  ;;  %v1068_v31 = vsel %vm473_vm0, %v1040_v24, 0.0  ;;  %v994_v32 = vpop.xlane.xlu0 %993 }
 0x1f8   : > { %1069 = vadd.xlane.f32.xlu0 %v1068_v31  ;;  %v985_v35 = vpop.xlane.xlu1 %984  ;;  %1066 = vadd.xlane.f32.xlu1 %v1065_v27  ;;  %v1015_v26 = vmul.f32 0.03125, %v994_v32  ;;  %v1045_v49 = vmul.f32 %v2350_v21, %v2350_v21 }
 0x1f9   : > { %v1012_v38 = vmul.f32 0.03125, %v985_v35  ;;  %v1042_v40 = vmul.f32 %v2346_v28, %v2346_v28 }
 0x1fa   : > { %v2365_v51 = vsub.f32 %v2212_v29, %v1015_v26  ;;  %v1083_v54 = vsel %vm473_vm0, %v1045_v49, 0.0 }
 0x1fb   : > { %v2358_v43 = vsub.f32 %v2215_v30, %v1012_v38  ;;  %v1074_v44 = vsel %vm473_vm0, %v1042_v40, 0.0  ;;  %v1000_v45 = vpop.xlane.xlu0 %999 }
 0x1fc   : > { %1075 = vadd.xlane.f32.xlu0 %v1074_v44  ;;  %v991_v46 = vpop.xlane.xlu1 %990  ;;  %1072 = vadd.xlane.f32.xlu1 %v1071_v42  ;;  %v1017_v30 = vmul.f32 0.03125, %v1000_v45  ;;  %v1047_v57 = vmul.f32 %v2365_v51, %v2365_v51  ;;  %v2425_v44 = vld [vmem:[%s2636_s7] ss:$0 sm:$0xff] }
 0x1fd   : > { %v1014_v50 = vmul.f32 0.03125, %v991_v46  ;;  %v1044_v4 = vmul.f32 %v2358_v43, %v2358_v43 }
 0x1fe   : > { %v2375_v55 = vsub.f32 %v2222_v33, %v1017_v30  ;;  %v1089_v33 = vsel %vm473_vm0, %v1047_v57, 0.0 }
 0x1ff   : > { %v2370_v41 = vsub.f32 %v2225_v34, %v1014_v50  ;;  %v1080_v48 = vsel %vm473_vm0, %v1044_v4, 0.0 }
 0x200   : > { %1081 = vadd.xlane.f32.xlu0 %v1080_v48  ;;  %v997_v53 = vpop.xlane.xlu1 %996  ;;  %1078 = vadd.xlane.f32.xlu1 %v1077_v25  ;;  %v1049_v62 = vmul.f32 %v2375_v55, %v2375_v55  ;;  %v2431_v25 = vld [vmem:[%s2637_s8] ss:$0 sm:$0xff] }
 0x201   : > { %v1016_v8 = vmul.f32 0.03125, %v997_v53  ;;  %v1046_v29 = vmul.f32 %v2370_v41, %v2370_v41 }
 0x202   : > { %v1095_v1 = vsel %vm473_vm0, %v1049_v62, 0.0 }
 0x203   : > { %v2382_v34 = vsub.f32 %v2232_v37, %v1016_v8  ;;  %v1086_v58 = vsel %vm473_vm0, %v1046_v29, 0.0 }
 0x204   : > { %1087 = vadd.xlane.f32.xlu0 %v1086_v58  ;;  %1084 = vadd.xlane.f32.xlu1 %v1083_v54  ;;  %v476_v59 = vpop.xlane.xlu1 %475 }
 0x205   : > { %v478_v60 = vmul.f32 0.03125, %v476_v59  ;;  %v1048_v61 = vmul.f32 %v2382_v34, %v2382_v34 }
 0x207   : > { %v2391_v0 = vsub.f32 %v2241_v39, %v478_v60  ;;  %v1092_v37 = vsel %vm473_vm0, %v1048_v61, 0.0 }
 0x208   : > { %1093 = vadd.xlane.f32.xlu0 %v1092_v37  ;;  %1090 = vadd.xlane.f32.xlu1 %v1089_v33 }
 0x209   : > { %v480_v2 = vmul.f32 %v2391_v0, %v2391_v0 }
 0x20b   : > { %v481_v14 = vsel %vm473_vm0, %v480_v2, 0.0 }
 0x20c   : > { %1096 = vadd.xlane.f32.xlu1 %v1095_v1  ;;  %482 = vadd.xlane.f32.xlu0 %v481_v14 }
 0x262   : > { %v2398_v3 = vpop.f32.mrb[0].mxu0 }
 0x263   : > { %v855_v6 = vpop.f32.mrb[1].mxu0 }
 0x269   : > { %v2400_v7 = vpop.f32.mrb[2].mxu0  ;;  %v2402_v39 = vpop.f32.mrb[0].mxu1 }
 0x26a   : > { %v865_v9 = vpop.f32.mrb[3].mxu0  ;;  %v2404_v13 = vpop.f32.mrb[1].mxu1 }
 0x270   : > { %v1052_v12 = vpop.xlane.xlu0 %1051 }
 0x271   : > { %v1098_v15 = vmul.f32 0.03125, %v1052_v12  ;;  %v2406_v16 = vpop.f32.mrb[4].mxu0  ;;  %v2408_v19 = vpop.f32.mrb[2].mxu1 }
 0x272   : > { %v2410_v17 = vpop.f32.mrb[5].mxu0  ;;  %v2412_v23 = vpop.f32.mrb[3].mxu1 }
 0x273   : > { %v1114_v24 = vadd.f32 1e-05, %v1098_v15 }
 0x274   : > { %v1058_v27 = vpop.xlane.xlu0 %1057 }
 0x275   : > { %1652 = vrsqrt.f32 %v1114_v24  ;;  %v1100_v22 = vmul.f32 0.03125, %v1058_v27 }
 0x277   : > { %v1116_v31 = vadd.f32 1e-05, %v1100_v22 }
 0x279   : > { %1654 = vrsqrt.f32 %v1116_v31  ;;  %v2414_v32 = vpop.f32.mrb[6].mxu0  ;;  %v2416_v35 = vpop.f32.mrb[4].mxu1 }
 0x27a   : > { %v2418_v36 = vpop.f32.mrb[7].mxu0  ;;  %v2420_v38 = vpop.f32.mrb[5].mxu1 }
 0x27d   : > { %v1055_v40 = vpop.xlane.xlu1 %1054 }
 0x27e   : > { %v1099_v42 = vmul.f32 0.03125, %v1055_v40 }
 0x27f   : > { %v1653_v26 = vpop.eup %1652 }
 0x280   : > { %v1146_v45 = vmul.f32 %v1653_v26, %v2297_v47  ;;  %v1115_v46 = vadd.f32 1e-05, %v1099_v42 }
 0x281   : > { %v2433_v49 = vpop.f32.mrb[6].mxu1  ;;  %v1064_v50 = vpop.xlane.xlu0 %1063 }
 0x282   : > { %v1168_v4 = vmul.f32 %v2425_v44, %v1146_v45  ;;  %1656 = vrsqrt.f32 %v1115_v46  ;;  %v1102_v30 = vmul.f32 0.03125, %v1064_v50  ;;  %v1061_v48 = vpop.xlane.xlu1 %1060  ;;  %v2436_v53 = vpop.f32.mrb[7].mxu1 }
 0x283   : > { %v1655_v54 = vpop.eup %1654  ;;  %v1101_v8 = vmul.f32 0.03125, %v1061_v48 }
 0x284   : > { %v1190_v47 = vadd.f32 %v2431_v25, %v1168_v4  ;;  %v1148_v29 = vmul.f32 %v1655_v54, %v2302_v52  ;;  %v1118_v57 = vadd.f32 1e-05, %v1102_v30 }
 0x285   : > { %v1117_v58 = vadd.f32 1e-05, %v1101_v8  ;;  %v1070_v59 = vpop.xlane.xlu0 %1069 }
 0x286   : > { %v1206_v60 = vadd.f32 %v1190_v47, %v855_v6  ;;  %v1170_v61 = vmul.f32 %v2425_v44, %v1148_v29  ;;  %1658 = vrsqrt.f32 %v1118_v57  ;;  %v1104_v33 = vmul.f32 0.03125, %v1070_v59  ;;  %v1067_v62 = vpop.xlane.xlu1 %1066 }
 0x287   : > { %1660 = vrsqrt.f32 %v1117_v58  ;;  %v1103_v37 = vmul.f32 0.03125, %v1067_v62 }
 0x288   : > { %1222 = vst.msk [vmem:[%s2443_s18] sm:$0xff] %vm473_vm0, %v1206_v60  ;;  %v1192_v52 = vadd.f32 %v2431_v25, %v1170_v61  ;;  %v1120_v1 = vadd.f32 1e-05, %v1104_v33 }
 0x289   : > { %v1119_v2 = vadd.f32 1e-05, %v1103_v37  ;;  %v1076_v14 = vpop.xlane.xlu0 %1075 }
 0x28a   : > { %v1208_v6 = vadd.f32 %v1192_v52, %v865_v9  ;;  %1662 = vrsqrt.f32 %v1120_v1  ;;  %v1106_v12 = vmul.f32 0.03125, %v1076_v14  ;;  %v1073_v15 = vpop.xlane.xlu1 %1072 }
 0x28b   : > { %1664 = vrsqrt.f32 %v1119_v2  ;;  %v1105_v24 = vmul.f32 0.03125, %v1073_v15 }
 0x28c   : > { %v1657_v27 = vpop.eup %1656  ;;  %1224 = vst.msk [vmem:[%s2443_s18 + $0x10] sm:$0xff] %vm473_vm0, %v1208_v6  ;;  %v1122_v22 = vadd.f32 1e-05, %v1106_v12 }
 0x28d   : > { %v1147_v31 = vmul.f32 %v1657_v27, %v2312_v10  ;;  %v1121_v40 = vadd.f32 1e-05, %v1105_v24  ;;  %v1082_v42 = vpop.xlane.xlu0 %1081 }
 0x28e   : > { %1666 = vrsqrt.f32 %v1122_v22  ;;  %v1108_v26 = vmul.f32 0.03125, %v1082_v42  ;;  %v1079_v45 = vpop.xlane.xlu1 %1078 }
 0x28f   : > { %v1169_v46 = vmul.f32 %v2425_v44, %v1147_v31  ;;  %1668 = vrsqrt.f32 %v1121_v40  ;;  %v1107_v9 = vmul.f32 0.03125, %v1079_v45 }
 0x290   : > { %v1659_v50 = vpop.eup %1658  ;;  %v1124_v4 = vadd.f32 1e-05, %v1108_v26 }
 0x291   : > { %v1661_v30 = vpop.eup %1660  ;;  %v1191_v48 = vadd.f32 %v2431_v25, %v1169_v46  ;;  %v1150_v54 = vmul.f32 %v1659_v50, %v2322_v11  ;;  %v1123_v8 = vadd.f32 1e-05, %v1107_v9  ;;  %v1088_v47 = vpop.xlane.xlu0 %1087 }
 0x292   : > { %v1149_v10 = vmul.f32 %v1661_v30, %v2309_v56  ;;  %1670 = vrsqrt.f32 %v1124_v4  ;;  %v1110_v29 = vmul.f32 0.03125, %v1088_v47  ;;  %v1085_v57 = vpop.xlane.xlu1 %1084 }
 0x293   : > { %v1207_v58 = vadd.f32 %v2398_v3, %v1191_v48  ;;  %v1172_v59 = vmul.f32 %v2425_v44, %v1150_v54  ;;  %1672 = vrsqrt.f32 %v1123_v8  ;;  %v1109_v60 = vmul.f32 0.03125, %v1085_v57 }
 0x294   : > { %v1663_v61 = vpop.eup %1662  ;;  %v1171_v33 = vmul.f32 %v2425_v44, %v1149_v10  ;;  %v1126_v62 = vadd.f32 1e-05, %v1110_v29 }
 0x295   : > { %v1665_v37 = vpop.eup %1664  ;;  %1223 = vst.msk [vmem:[%s2443_s18 + $0x8] sm:$0xff] %vm473_vm0, %v1207_v58  ;;  %v1194_v11 = vadd.f32 %v2431_v25, %v1172_v59  ;;  %v1152_v56 = vmul.f32 %v1663_v61, %v2334_v18  ;;  %v1125_v52 = vadd.f32 1e-05, %v1109_v60  ;;  %v1094_v1 = vpop.xlane.xlu0 %1093 }
 0x296   : > { %v1193_v3 = vadd.f32 %v2431_v25, %v1171_v33  ;;  %v1151_v2 = vmul.f32 %v1665_v37, %v2317_v63  ;;  %1674 = vrsqrt.f32 %v1126_v62  ;;  %v1112_v14 = vmul.f32 0.03125, %v1094_v1  ;;  %v1091_v6 = vpop.xlane.xlu1 %1090 }
 0x297   : > { %v1210_v12 = vadd.f32 %v1194_v11, %v2410_v17  ;;  %v1174_v15 = vmul.f32 %v2425_v44, %v1152_v56  ;;  %1676 = vrsqrt.f32 %v1125_v52  ;;  %v1111_v24 = vmul.f32 0.03125, %v1091_v6 }
 0x298   : > { %v1667_v27 = vpop.eup %1666  ;;  %v1209_v18 = vadd.f32 %v2400_v7, %v1193_v3  ;;  %v1173_v22 = vmul.f32 %v2425_v44, %v1151_v2  ;;  %v1128_v31 = vadd.f32 1e-05, %v1112_v14 }
 0x299   : > { %v1669_v40 = vpop.eup %1668  ;;  %1226 = vst.msk [vmem:[%s2443_s18 + $0x20] sm:$0xff] %vm473_vm0, %v1210_v12  ;;  %v1196_v63 = vadd.f32 %v2431_v25, %v1174_v15  ;;  %v1154_v42 = vmul.f32 %v1667_v27, %v2346_v28  ;;  %v1127_v26 = vadd.f32 1e-05, %v1111_v24  ;;  %v483_v45 = vpop.xlane.xlu0 %482  ;;  %v1447_v27 = vld [vmem:[%s2635_s6] ss:$0 sm:$0xff] }
 0x29a   : > { %1225 = vst.msk [vmem:[%s2443_s18 + $0x18] sm:$0xff] %vm473_vm0, %v1209_v18  ;;  %v1195_v17 = vadd.f32 %v2431_v25, %v1173_v22  ;;  %v1153_v46 = vmul.f32 %v1669_v40, %v2327_v5  ;;  %1678 = vrsqrt.f32 %v1128_v31  ;;  %v484_v7 = vmul.f32 0.03125, %v483_v45  ;;  %v1097_v9 = vpop.xlane.xlu1 %1096 }
 0x29b   : > { %v1212_v50 = vadd.f32 %v1196_v63, %v2418_v36  ;;  %v1176_v4 = vmul.f32 %v2425_v44, %v1154_v42  ;;  %1680 = vrsqrt.f32 %v1127_v26  ;;  %v1113_v30 = vmul.f32 0.03125, %v1097_v9 }
 0x29c   : > { %v1671_v28 = vpop.eup %1670  ;;  %v1211_v48 = vadd.f32 %v2406_v16, %v1195_v17  ;;  %v1175_v54 = vmul.f32 %v2425_v44, %v1153_v46  ;;  %v485_v8 = vadd.f32 1e-05, %v484_v7 }
 0x29d   : > { %v1673_v47 = vpop.eup %1672  ;;  %1228 = vst.msk [vmem:[%s2443_s18 + $0x30] sm:$0xff] %vm473_vm0, %v1212_v50  ;;  %v1198_v5 = vadd.f32 %v2431_v25, %v1176_v4  ;;  %v1156_v10 = vmul.f32 %v1671_v28, %v2358_v43  ;;  %v1129_v36 = vadd.f32 1e-05, %v1113_v30 }
 0x29e   : > { %1227 = vst.msk [vmem:[%s2443_s18 + $0x28] sm:$0xff] %vm473_vm0, %v1211_v48  ;;  %v1197_v29 = vadd.f32 %v2431_v25, %v1175_v54  ;;  %v1155_v57 = vmul.f32 %v1673_v47, %v2338_v20  ;;  %1682 = vrsqrt.f32 %v485_v8 }
 0x29f   : > { %v1214_v16 = vadd.f32 %v1198_v5, %v2404_v13  ;;  %v1178_v58 = vmul.f32 %v2425_v44, %v1156_v10  ;;  %1684 = vrsqrt.f32 %v1129_v36 }
 0x2a0   : > { %v1675_v59 = vpop.eup %1674  ;;  %v1213_v60 = vadd.f32 %v2414_v32, %v1197_v29  ;;  %v1177_v43 = vmul.f32 %v2425_v44, %v1155_v57 }
 0x2a1   : > { %v1677_v61 = vpop.eup %1676  ;;  %1230 = vst.msk [vmem:[%s2443_s18 + $0x40] sm:$0xff] %vm473_vm0, %v1214_v16  ;;  %v1200_v33 = vadd.f32 %v2431_v25, %v1178_v58  ;;  %v1158_v20 = vmul.f32 %v1675_v59, %v2370_v41 }
 0x2a2   : > { %1229 = vst.msk [vmem:[%s2443_s18 + $0x38] sm:$0xff] %vm473_vm0, %v1213_v60  ;;  %v1199_v13 = vadd.f32 %v2431_v25, %v1177_v43  ;;  %v1157_v62 = vmul.f32 %v1677_v61, %v2350_v21 }
 0x2a3   : > { %v1216_v37 = vadd.f32 %v1200_v33, %v2412_v23  ;;  %v1180_v32 = vmul.f32 %v2425_v44, %v1158_v20 }
 0x2a4   : > { %v1679_v11 = vpop.eup %1678  ;;  %v1215_v56 = vadd.f32 %v2402_v39, %v1199_v13  ;;  %v1179_v52 = vmul.f32 %v2425_v44, %v1157_v62 }
 0x2a5   : > { %v1681_v1 = vpop.eup %1680  ;;  %1232 = vst.msk [vmem:[%s2443_s18 + $0x50] sm:$0xff] %vm473_vm0, %v1216_v37  ;;  %v1202_v41 = vadd.f32 %v2431_v25, %v1180_v32  ;;  %v1160_v21 = vmul.f32 %v1679_v11, %v2382_v34  ;;  %v1446_v34 = vld [vmem:[%s2634_s5] ss:$0 sm:$0xff] }
 0x2a6   : > { %1231 = vst.msk [vmem:[%s2443_s18 + $0x48] sm:$0xff] %vm473_vm0, %v1215_v56  ;;  %v1201_v23 = vadd.f32 %v2431_v25, %v1179_v52  ;;  %v1159_v3 = vmul.f32 %v1681_v1, %v2365_v51 }
 0x2a7   : > { %v1218_v39 = vadd.f32 %v1202_v41, %v2420_v38  ;;  %v1182_v2 = vmul.f32 %v2425_v44, %v1160_v21 }
 0x2a8   : > { %v1683_v14 = vpop.eup %1682  ;;  %v1217_v6 = vadd.f32 %v2408_v19, %v1201_v23  ;;  %v1181_v12 = vmul.f32 %v2425_v44, %v1159_v3 }
 0x2a9   : > { %v1685_v15 = vpop.eup %1684  ;;  %1234 = vst.msk [vmem:[%s2443_s18 + $0x60] sm:$0xff] %vm473_vm0, %v1218_v39  ;;  %v1204_v51 = vadd.f32 %v2431_v25, %v1182_v2  ;;  %v487_v38 = vmul.f32 %v1683_v14, %v2391_v0 }
 0x2aa   : > { %1233 = vst.msk [vmem:[%s2443_s18 + $0x58] sm:$0xff] %vm473_vm0, %v1217_v6  ;;  %v1203_v19 = vadd.f32 %v2431_v25, %v1181_v12  ;;  %v1161_v24 = vmul.f32 %v1685_v15, %v2375_v55 }
 0x2ab   : > { %v1220_v18 = vadd.f32 %v1204_v51, %v2436_v53  ;;  %v494_v22 = vmul.f32 %v1446_v34, %v487_v38 }
 0x2ac   : > { %v1219_v0 = vadd.f32 %v2416_v35, %v1203_v19  ;;  %v1183_v31 = vmul.f32 %v2425_v44, %v1161_v24 }
 0x2ad   : > { %1236 = vst.msk [vmem:[%s2443_s18 + $0x70] sm:$0xff] %vm473_vm0, %v1220_v18  ;;  %v501_v55 = vadd.f32 %v1447_v27, %v494_v22 }
 0x2ae   : > { %1235 = vst.msk [vmem:[%s2443_s18 + $0x68] sm:$0xff] %vm473_vm0, %v1219_v0  ;;  %v1205_v53 = vadd.f32 %v2431_v25, %v1183_v31 }
 0x2af   : > { %502 = vst.msk [vmem:[%s446_s10] sm:$0xff] %vm473_vm0, %v501_v55 }
 0x2b0   : > { %v1221_v35 = vadd.f32 %v2433_v49, %v1205_v53 }
 0x2b1   : > { %1757 = shalt.err (!%p1754_p13)
}
 0x2b2   : > { %s1758_s10 = scalar_lea.hbm %s2540_s21, 128  ;;  %s1762_s23 = scalar_lea.hbm %s2674_s28, 256 }
 0x2b3   : > { %p1759_p2 = scmp.ne.s32.totalorder %s2540_s21, %s1758_s10  ;;  %p1763_p4 = scmp.lt.u32.totalorder %s2540_s21, %s2674_s28 }
 0x2b4   : > { %p1764_p8 = scmp.lt.u32.totalorder %s1762_s23, %s1758_s10  ;;  %p1766_p10 = scmp.lt.u32.totalorder %s1758_s10, %s2540_s21 }
 0x2b5   : > { %p1760_p6 = pnand %p1759_p2, %p2676_p11 }
 0x2b6   : > { %p1765_p5 = por %p1764_p8, %p1763_p4 }
 0x2b7   : > { %p1761_p12 = pneg %p1760_p6 }
 0x2b8   : > { %p1767_p1 = por %p1766_p10, %p1765_p5 }
 0x2ba   : > { %p1768_p0 = pnand %p1767_p1, %p1761_p12 }
 0x2bc   : > { %1771 = shalt.err (!%p1768_p0)
}
 0x2bd   : > { %1568 = dma.vmem_to_hbm [thread:$0]  (%p2676_p11), %s2544_s9, 128, %s2540_s21, %s1239_s29   ;;  %1237 = vst.msk [vmem:[%s2443_s18 + $0x78] sm:$0xff] %vm473_vm0, %v1221_v35 }
 0x2be   : > { %s1244_s0 = scalar_lea.sflag [#allocation9], %s2089_s11  ;;  %s1772_s26 = scalar_lea.vmem %s2554_s30, 2048 }
 0x2bf   : > { %p1773_p9 = scmp.ne.s32.totalorder %s2554_s30, %s1772_s26  ;;  %s1873_s10 = smov [#allocation8]  }
 0x2c0   : > { %s1776_s20 = sshll.u32 %s1873_s10, 4  ;;  %s1777_s20 = int_to_ptr.vmem [resolvable:$false] %s1776_s20 }
 0x2c1   : > { %p1774_p3 = pnand %p1773_p9, %p2676_p11  ;;  %s1778_s16 = scalar_lea.vmem %s1777_s20, 4096 }
 0x2c2   : > { %p1779_p13 = scmp.lt.s32.totalorder %s2554_s30, %s1777_s20  ;;  %p1780_p2 = scmp.lt.s32.totalorder %s1778_s16, %s1772_s26 }
 0x2c3   : > { %p1775_p7 = pneg %p1774_p3 }
 0x2c4   : > { %p1781_p6 = por %p1780_p2, %p1779_p13 }
 0x2c6   : > { %p1782_p12 = pnand %p1781_p6, %p1775_p7 }
 0x2c8   : > { %1785 = shalt.err (!%p1782_p12)
}
 0x2c9   : > { %s1786_s18 = scalar_lea.hbm %s2552_s13, 2048  ;;  %s1790_s29 = scalar_lea.hbm %s2675_s24, 4096 }
 0x2ca   : > { %p1787_p4 = scmp.ne.s32.totalorder %s2552_s13, %s1786_s18  ;;  %p1791_p10 = scmp.lt.u32.totalorder %s2552_s13, %s2675_s24 }
 0x2cb   : > { %p1792_p1 = scmp.lt.u32.totalorder %s1790_s29, %s1786_s18  ;;  %p1794_p9 = scmp.lt.u32.totalorder %s1786_s18, %s2552_s13 }
 0x2cc   : > { %p1788_p8 = pnand %p1787_p4, %p2676_p11 }
 0x2cd   : > { %p1793_p0 = por %p1792_p1, %p1791_p10 }
 0x2ce   : > { %p1789_p5 = pneg %p1788_p8 }
 0x2cf   : > { %p1795_p3 = por %p1794_p9, %p1793_p0 }
 0x2d1   : > { %p1796_p7 = pnand %p1795_p3, %p1789_p5 }
 0x2d3   : > { %1799 = shalt.err (!%p1796_p7)
}
 0x2d4   : > { %s1874_s27 = smov 128   ;;  %s1875_s26 = smov 8  }
 0x2d5   : > { %1569 = dma.vmem_to_hbm [thread:$0]  (%p2676_p11), %s2554_s30, 2048, %s2552_s13, %s1244_s0, %s1874_s27, %s1874_s27, %s1875_s26  }
 0x2d6 PF: > { %s2677_s10 = sld [smem:[#allocation14_spill]]  ;;  %s2678_s20 = sld [smem:[#allocation16_spill]] }
 0x2d7   : > { %s2679_s16 = sld [smem:[#allocation15_spill]] }
 0x2dc   : > { %s1288_s9 = sand.u32 1, %s2677_s10   ;;  %p2680_p13 = scmp.ne.s32.totalorder %s2678_s20, 0 }
 0x2dd   : > { %p2681_p2 = scmp.ge.s32.totalorder %s2679_s16, 2  ;;  %s1289_s18 = scalar_lea.sflag [#allocation4], %s1288_s9 }
 0x2df   : > { %p1581_p6 = pnand %p2681_p2, %p2680_p13 }
 0x2e1   : > { %1833 = dma.done.wait (!%p1581_p6), %s1289_s18, 128  }
 0x2e2   : > { %1835 = vsyncadd (!%p1581_p6), %s1289_s18, 4294967168  ;;  %s1298_s21 = scalar_lea.sflag [#allocation9], %s1288_s9 }
 0x2e3   : > { %1837 = dma.done.wait (!%p1581_p6), %s1298_s21, 2048  }
 0x2e4   : > { %1839 = vsyncadd (!%p1581_p6), %s1298_s21, 4294965248  ;;  %s31_s18 = sadd.s32 1, %s2679_s16   ;;  %s2682_s13 = smov %s1846_s14 }
 0x2e5   : > { %p28_p12 = scmp.ge.s32.totalorder %s31_s18, 4   ;;  %s2683_s14 = smov %s1850_s15 }
 0x2e6   : > { %s2684_s15 = smov %s2050_s19  ;;  %s2685_s16 = smov %s1858_s17 }
 0x2e7   : > { %s2686_s17 = smov %s2688_s12  ;;  %30 = sbr.rel (!%p28_p12) target bundleno = 13 (0xd), region = 134 }
 0x2ee   :  { %1303 = vsyncpa [#allocation3], 1 }
 0x2ef   :  { %1305 = vsyncpa [#allocation3 + $0x1], 1 }
 0x2f0   :  { %1306 = vsyncpa [#allocation6], 1 }
 0x2f1   :  { %1308 = vsyncpa [#allocation6 + $0x1], 1 }
 0x2f2   :  { %1309 = vsyncpa [#allocation4], 1 }
 0x2f3   :  { %1311 = vsyncpa [#allocation4 + $0x1], 1 }
 0x2f4   :  { %1312 = vsyncpa [#allocation9], 1 }
 0x2f5   :  { %1314 = vsyncpa [#allocation9 + $0x1], 1 }

</bundles_post_ra>
